<compile_context>
chip_gen: v7x
topology: tpu7x:2x2x1
jax: 0.10.0
libtpu: 0.0.40
codegen_flags: <defaults>
</compile_context>

<pallas_src>
import jax
import jax.numpy as jnp
import numpy as np
from jax import lax
from jax.experimental import pallas as pl
from jax.experimental.pallas import tpu as pltpu

HIDDEN = 32      # hidden_size
OUTPUT = 7       # output_size (must equal LSTM input_size=7 for the module to run)
MAX_LEN = 8      # max_length
NUM_LAYERS = 2


def _gates_to_hc(gates, c):
    """PyTorch LSTM gate math with whole-vector activations (2 EUP passes)."""
    sig = jax.nn.sigmoid(gates)          # (1, 4H) — one EUP pass
    tah = jnp.tanh(gates)                # (1, 4H) — one EUP pass
    i = sig[:, 0 * HIDDEN:1 * HIDDEN]
    f = sig[:, 1 * HIDDEN:2 * HIDDEN]
    g = tah[:, 2 * HIDDEN:3 * HIDDEN]
    o = sig[:, 3 * HIDDEN:4 * HIDDEN]
    c_new = f * c + i * g
    h_new = o * jnp.tanh(c_new)          # third EUP pass
    return h_new, c_new


def decoder_kernel(h_in_ref, c_in_ref,
                   wih0_ref, b0_ref,
                   w1x_ref, b1_ref,
                   wout_ref, bout_ref,
                   logp_ref, h_out_ref, c_out_ref):
    h0 = h_in_ref[0:1, :]
    c0 = c_in_ref[0:1, :]
    h1 = h_in_ref[1:2, :]
    c1 = c_in_ref[1:2, :]

    wih0 = wih0_ref[...]     # (OUTPUT, 4H)   W_ih(l0)^T
    b0 = b0_ref[...]         # (1, 4H)
    w1x = w1x_ref[...]       # (2H, 8H)  [[Wih1^T ; Whh1^T] | [Whh0^T ; 0]]
    b1 = b1_ref[...]         # (1, 4H)
    wout = wout_ref[...]     # (H, OUTPUT)
    bout = bout_ref[...]     # (1, OUTPUT)

    G = 4 * HIDDEN
    col_out = lax.broadcasted_iota(jnp.int32, (1, OUTPUT), 1)    # class lane ids
    row_sel = lax.broadcasted_iota(jnp.int32, (OUTPUT, 1), 0)    # wih0 row ids

    # Initial input = one_hot(OUTPUT-1)  ->  its W_ih(l0) contribution is a
    # static row of wih0 (no matmul, no one-hot materialization).
    xw0 = wih0[OUTPUT - 1:OUTPUT, :]                             # (1, 4H)

    # Prologue: h0_init @ Whh0 via the fused weight's extra lanes (lanes 4H:8H
    # ignore h1 because those rows are zero); lanes 0:4H are discarded.
    a_pre = jnp.dot(jnp.concatenate([h0, h1], axis=-1), w1x,
                    preferred_element_type=jnp.float32)[:, G:]   # (1, 4H)

    # TODO(synk): nn.LSTM inter-layer dropout(p=0.5) is train-time RNG; eval semantics used.
    logits_rows = []
    for step in range(MAX_LEN):                                  # fully unrolled
        # ---- layer 0: gates = (x @ W_ih) + h0_prev @ W_hh + b
        #      (x-part pre-selected, hidden-part precomputed by prev fused matmul)
        g0 = xw0 + a_pre + b0
        h0, c0 = _gates_to_hc(g0, c0)

        # ---- fused matmul: layer-1 gates (this step) + layer-0 hidden (next step)
        hcat = jnp.concatenate([h0, h1], axis=-1)                # (1, 2H)
        big = jnp.dot(hcat, w1x, preferred_element_type=jnp.float32)   # (1, 8H)
        g1 = big[:, :G] + b1
        a_pre = big[:, G:]                                       # h0 @ Whh0 for next step
        h1, c1 = _gates_to_hc(g1, c1)

        # ---- output head (raw logits only; log_softmax deferred)
        logits = jnp.dot(h1, wout, preferred_element_type=jnp.float32) + bout
        logits_rows.append(logits)

        if step < MAX_LEN - 1:
            # greedy feedback: argmax (first max wins on ties, like topk) ->
            # directly select the corresponding row of W_ih(l0).
            m = jnp.max(logits, axis=-1, keepdims=True)                        # (1,1)
            idx = jnp.min(jnp.where(logits == m, col_out, OUTPUT),
                          axis=-1, keepdims=True)                              # (1,1)
            sel = (row_sel == idx).astype(jnp.float32)                         # (OUTPUT,1)
            xw0 = jnp.sum(sel * wih0, axis=0, keepdims=True)                   # (1,4H)

    # ---- epilogue: log_softmax over the whole (MAX_LEN, OUTPUT) block, one store
    all_logits = jnp.concatenate(logits_rows, axis=0)            # (MAX_LEN, OUTPUT)
    m = jnp.max(all_logits, axis=-1, keepdims=True)
    z = all_logits - m
    logp_ref[...] = z - jnp.log(jnp.sum(jnp.exp(z), axis=-1, keepdims=True))

    h_out_ref[...] = jnp.concatenate([h0, h1], axis=0)
    c_out_ref[...] = jnp.concatenate([c0, c1], axis=0)


@jax.jit
def decoder_rnn(encoder_h, encoder_c, params):
    """params = (wih0, whh0, b0, wih1, whh1, b1, wout, bout), all pre-transposed."""
    wih0, whh0, b0, wih1, whh1, b1, wout, bout = params
    # Fuse layer-1 input/hidden weights and layer-0 hidden weight host-side:
    #   (2H, 8H) = [[Wih1^T ; Whh1^T] | [Whh0^T ; 0]]
    w1 = jnp.concatenate([wih1, whh1], axis=0)                          # (2H, 4H)
    wx = jnp.concatenate([whh0, jnp.zeros_like(whh0)], axis=0)          # (2H, 4H)
    w1x = jnp.concatenate([w1, wx], axis=1)                             # (2H, 8H)

    kernel_args = (encoder_h, encoder_c, wih0, b0, w1x, b1, wout, bout)
    vmem_spec = pl.BlockSpec(memory_space=pltpu.MemorySpace.VMEM)
    out_shapes = (
        jax.ShapeDtypeStruct((MAX_LEN, OUTPUT), jnp.float32),
        jax.ShapeDtypeStruct((NUM_LAYERS, HIDDEN), jnp.float32),
        jax.ShapeDtypeStruct((NUM_LAYERS, HIDDEN), jnp.float32),
    )
    logp, h_out, c_out = pl.pallas_call(
        decoder_kernel,
        out_shape=out_shapes,
        in_specs=[vmem_spec] * len(kernel_args),
        out_specs=(vmem_spec, vmem_spec, vmem_spec),
    )(*kernel_args)
    return logp, (h_out, c_out)


# ---------------- pure-JAX reference (for correctness check) ----------------
def _lstm_cell_ref(x, h, c, w_ih_t, w_hh_t, b):
    gates = (jnp.dot(x, w_ih_t, preferred_element_type=jnp.float32)
             + jnp.dot(h, w_hh_t, preferred_element_type=jnp.float32) + b)
    i = jax.nn.sigmoid(gates[:, 0 * HIDDEN:1 * HIDDEN])
    f = jax.nn.sigmoid(gates[:, 1 * HIDDEN:2 * HIDDEN])
    g = jnp.tanh(gates[:, 2 * HIDDEN:3 * HIDDEN])
    o = jax.nn.sigmoid(gates[:, 3 * HIDDEN:4 * HIDDEN])
    c_new = f * c + i * g
    h_new = o * jnp.tanh(c_new)
    return h_new, c_new


def decoder_rnn_ref(encoder_h, encoder_c, params):
    wih0, whh0, b0, wih1, whh1, b1, wout, bout = params
    x = jnp.zeros((1, OUTPUT), jnp.float32).at[0, OUTPUT - 1].set(1.0)
    h0, c0 = encoder_h[0:1], encoder_c[0:1]
    h1, c1 = encoder_h[1:2], encoder_c[1:2]
    outs = []
    for _ in range(MAX_LEN):
        h0, c0 = _lstm_cell_ref(x, h0, c0, wih0, whh0, b0)
        h1, c1 = _lstm_cell_ref(h0, h1, c1, wih1, whh1, b1)
        logits = jnp.dot(h1, wout, preferred_element_type=jnp.float32) + bout
        outs.append(logits)
        idx = jnp.argmax(logits, axis=-1)[0]
        x = jnp.zeros((1, OUTPUT), jnp.float32).at[0, idx].set(1.0)
    outs = jnp.concatenate(outs, axis=0)
    logp = jax.nn.log_softmax(outs, axis=-1)
    return logp, (jnp.concatenate([h0, h1], 0), jnp.concatenate([c0, c1], 0))


def init_params(key):
    """Deterministic init mimicking nn.LSTM / nn.Linear uniform(-1/sqrt(H), 1/sqrt(H))."""
    k = 1.0 / np.sqrt(HIDDEN)
    keys = jax.random.split(key, 10)
    u = lambda kk, shape: jax.random.uniform(kk, shape, jnp.float32, -k, k)
    wih0 = u(keys[0], (OUTPUT, 4 * HIDDEN))          # W_ih(l0)^T : (7, 4H)
    whh0 = u(keys[1], (HIDDEN, 4 * HIDDEN))          # W_hh(l0)^T
    b0 = u(keys[2], (1, 4 * HIDDEN)) + u(keys[3], (1, 4 * HIDDEN))   # b_ih + b_hh
    wih1 = u(keys[4], (HIDDEN, 4 * HIDDEN))          # W_ih(l1)^T
    whh1 = u(keys[5], (HIDDEN, 4 * HIDDEN))          # W_hh(l1)^T
    b1 = u(keys[6], (1, 4 * HIDDEN)) + u(keys[7], (1, 4 * HIDDEN))
    wout = u(keys[8], (HIDDEN, OUTPUT))              # Linear weight^T
    bout = u(keys[9], (1, OUTPUT))
    return (wih0, whh0, b0, wih1, whh1, b1, wout, bout)


if __name__ == "__main__":
    key = jax.random.PRNGKey(0)
    kp, kh, kc = jax.random.split(key, 3)
    params = init_params(kp)
    encoder_h = jax.random.normal(kh, (NUM_LAYERS, HIDDEN), jnp.float32)
    encoder_c = jax.random.normal(kc, (NUM_LAYERS, HIDDEN), jnp.float32)

    (logp, (h_out, c_out)) = decoder_rnn(encoder_h, encoder_c, params)
    jax.block_until_ready((logp, h_out, c_out))

    logp_ref, (h_ref, c_ref) = decoder_rnn_ref(encoder_h, encoder_c, params)
    np.testing.assert_allclose(np.asarray(logp), np.asarray(logp_ref), atol=1e-4, rtol=1e-4)
    np.testing.assert_allclose(np.asarray(h_out), np.asarray(h_ref), atol=1e-4, rtol=1e-4)
    np.testing.assert_allclose(np.asarray(c_out), np.asarray(c_ref), atol=1e-4, rtol=1e-4)

    print("KERNEL_OK")
</pallas_src>

<mosaic_0001>
module attributes {stable_mosaic.version = 11 : i64} {
  func.func @decoder_kernel(%arg0: memref<2x32xf32, #tpu.memory_space<vmem>>, %arg1: memref<2x32xf32, #tpu.memory_space<vmem>>, %arg2: memref<7x128xf32, #tpu.memory_space<vmem>>, %arg3: memref<1x128xf32, #tpu.memory_space<vmem>>, %arg4: memref<64x256xf32, #tpu.memory_space<vmem>>, %arg5: memref<1x128xf32, #tpu.memory_space<vmem>>, %arg6: memref<32x7xf32, #tpu.memory_space<vmem>>, %arg7: memref<1x7xf32, #tpu.memory_space<vmem>>, %arg8: memref<8x7xf32, #tpu.memory_space<vmem>>, %arg9: memref<2x32xf32, #tpu.memory_space<vmem>>, %arg10: memref<2x32xf32, #tpu.memory_space<vmem>>) attributes {dimension_semantics = [], scalar_prefetch = 0 : i64, scratch_operands = 0 : i64, tpu.core_type = #tpu.core_type<tc>} {
    %c0 = arith.constant 0 : index
    %c0_0 = arith.constant 0 : index
    %0 = vector.load %arg0[%c0, %c0_0] : memref<2x32xf32, #tpu.memory_space<vmem>>, vector<1x32xf32>
    %c0_1 = arith.constant 0 : index
    %c0_2 = arith.constant 0 : index
    %1 = vector.load %arg1[%c0_1, %c0_2] : memref<2x32xf32, #tpu.memory_space<vmem>>, vector<1x32xf32>
    %c1 = arith.constant 1 : index
    %c0_3 = arith.constant 0 : index
    %2 = vector.load %arg0[%c1, %c0_3] : memref<2x32xf32, #tpu.memory_space<vmem>>, vector<1x32xf32>
    %c1_4 = arith.constant 1 : index
    %c0_5 = arith.constant 0 : index
    %3 = vector.load %arg1[%c1_4, %c0_5] : memref<2x32xf32, #tpu.memory_space<vmem>>, vector<1x32xf32>
    %c0_6 = arith.constant 0 : index
    %c0_7 = arith.constant 0 : index
    %4 = vector.load %arg2[%c0_6, %c0_7] : memref<7x128xf32, #tpu.memory_space<vmem>>, vector<7x128xf32>
    %c0_8 = arith.constant 0 : index
    %c0_9 = arith.constant 0 : index
    %5 = vector.load %arg3[%c0_8, %c0_9] : memref<1x128xf32, #tpu.memory_space<vmem>>, vector<1x128xf32>
    %c0_10 = arith.constant 0 : index
    %c0_11 = arith.constant 0 : index
    %6 = vector.load %arg4[%c0_10, %c0_11] : memref<64x256xf32, #tpu.memory_space<vmem>>, vector<64x256xf32>
    %c0_12 = arith.constant 0 : index
    %c0_13 = arith.constant 0 : index
    %7 = vector.load %arg5[%c0_12, %c0_13] : memref<1x128xf32, #tpu.memory_space<vmem>>, vector<1x128xf32>
    %c0_14 = arith.constant 0 : index
    %c0_15 = arith.constant 0 : index
    %8 = vector.load %arg6[%c0_14, %c0_15] : memref<32x7xf32, #tpu.memory_space<vmem>>, vector<32x7xf32>
    %c0_16 = arith.constant 0 : index
    %c0_17 = arith.constant 0 : index
    %9 = vector.load %arg7[%c0_16, %c0_17] : memref<1x7xf32, #tpu.memory_space<vmem>>, vector<1x7xf32>
    %10 = tpu.iota {dimensions = array<i32: 1>} : vector<1x7xi32>
    %11 = tpu.iota {dimensions = array<i32: 0>} : vector<7x1xi32>
    %12 = vector.extract_strided_slice %4 {offsets = [6, 0], sizes = [1, 128], strides = [1, 1]} : vector<7x128xf32> to vector<1x128xf32>
    %13 = tpu.concatenate %0, %2 in 1 : vector<1x32xf32>, vector<1x32xf32> -> vector<1x64xf32>
    %cst = arith.constant dense<0.000000e+00> : vector<1x256xf32>
    %14 = tpu.matmul %13, %6, %cst {dimension_numbers = #tpu.dot_dimension_numbers<[1], [0], [0], [1], [0, 0, 1, 1], [], []>} : vector<1x64xf32>, vector<64x256xf32>, vector<1x256xf32> -> vector<1x256xf32>
    %15 = vector.extract_strided_slice %14 {offsets = [0, 128], sizes = [1, 128], strides = [1, 1]} : vector<1x256xf32> to vector<1x128xf32>
    %16 = arith.addf %12, %15 : vector<1x128xf32>
    %17 = arith.addf %16, %5 : vector<1x128xf32>
    %18 = arith.negf %17 : vector<1x128xf32>
    %19 = math.exp %18 : vector<1x128xf32>
    %cst_18 = arith.constant 1.000000e+00 : f32
    %20 = vector.broadcast %cst_18 : f32 to vector<1x128xf32>
    %21 = arith.addf %20, %19 : vector<1x128xf32>
    %22 = arith.divf %20, %21 : vector<1x128xf32>
    %23 = math.tanh %17 : vector<1x128xf32>
    %24 = vector.extract_strided_slice %22 {offsets = [0, 0], sizes = [1, 32], strides = [1, 1]} : vector<1x128xf32> to vector<1x32xf32>
    %25 = vector.extract_strided_slice %22 {offsets = [0, 32], sizes = [1, 32], strides = [1, 1]} : vector<1x128xf32> to vector<1x32xf32>
    %26 = vector.extract_strided_slice %23 {offsets = [0, 64], sizes = [1, 32], strides = [1, 1]} : vector<1x128xf32> to vector<1x32xf32>
    %27 = vector.extract_strided_slice %22 {offsets = [0, 96], sizes = [1, 32], strides = [1, 1]} : vector<1x128xf32> to vector<1x32xf32>
    %28 = arith.mulf %25, %1 : vector<1x32xf32>
    %29 = arith.mulf %24, %26 : vector<1x32xf32>
    %30 = arith.addf %28, %29 : vector<1x32xf32>
    %31 = math.tanh %30 : vector<1x32xf32>
    %32 = arith.mulf %27, %31 : vector<1x32xf32>
    %33 = tpu.concatenate %32, %2 in 1 : vector<1x32xf32>, vector<1x32xf32> -> vector<1x64xf32>
    %cst_19 = arith.constant dense<0.000000e+00> : vector<1x256xf32>
    %34 = tpu.matmul %33, %6, %cst_19 {dimension_numbers = #tpu.dot_dimension_numbers<[1], [0], [0], [1], [0, 0, 1, 1], [], []>} : vector<1x64xf32>, vector<64x256xf32>, vector<1x256xf32> -> vector<1x256xf32>
    %35 = vector.extract_strided_slice %34 {offsets = [0, 0], sizes = [1, 128], strides = [1, 1]} : vector<1x256xf32> to vector<1x128xf32>
    %36 = arith.addf %35, %7 : vector<1x128xf32>
    %37 = vector.extract_strided_slice %34 {offsets = [0, 128], sizes = [1, 128], strides = [1, 1]} : vector<1x256xf32> to vector<1x128xf32>
    %38 = arith.negf %36 : vector<1x128xf32>
    %39 = math.exp %38 : vector<1x128xf32>
    %cst_20 = arith.constant 1.000000e+00 : f32
    %40 = vector.broadcast %cst_20 : f32 to vector<1x128xf32>
    %41 = arith.addf %40, %39 : vector<1x128xf32>
    %42 = arith.divf %40, %41 : vector<1x128xf32>
    %43 = math.tanh %36 : vector<1x128xf32>
    %44 = vector.extract_strided_slice %42 {offsets = [0, 0], sizes = [1, 32], strides = [1, 1]} : vector<1x128xf32> to vector<1x32xf32>
    %45 = vector.extract_strided_slice %42 {offsets = [0, 32], sizes = [1, 32], strides = [1, 1]} : vector<1x128xf32> to vector<1x32xf32>
    %46 = vector.extract_strided_slice %43 {offsets = [0, 64], sizes = [1, 32], strides = [1, 1]} : vector<1x128xf32> to vector<1x32xf32>
    %47 = vector.extract_strided_slice %42 {offsets = [0, 96], sizes = [1, 32], strides = [1, 1]} : vector<1x128xf32> to vector<1x32xf32>
    %48 = arith.mulf %45, %3 : vector<1x32xf32>
    %49 = arith.mulf %44, %46 : vector<1x32xf32>
    %50 = arith.addf %48, %49 : vector<1x32xf32>
    %51 = math.tanh %50 : vector<1x32xf32>
    %52 = arith.mulf %47, %51 : vector<1x32xf32>
    %cst_21 = arith.constant dense<0.000000e+00> : vector<1x7xf32>
    %53 = tpu.matmul %52, %8, %cst_21 {dimension_numbers = #tpu.dot_dimension_numbers<[1], [0], [0], [1], [0, 0, 1, 1], [], []>} : vector<1x32xf32>, vector<32x7xf32>, vector<1x7xf32> -> vector<1x7xf32>
    %54 = arith.addf %53, %9 : vector<1x7xf32>
    %cst_22 = arith.constant dense<0xFF800000> : vector<1xf32>
    %55 = vector.multi_reduction <maximumf>, %54, %cst_22 [1] : vector<1x7xf32> to vector<1xf32>
    %56 = vector.shape_cast %55 : vector<1xf32> to vector<1x1xf32>
    %57 = vector.broadcast %56 : vector<1x1xf32> to vector<1x7xf32>
    %58 = arith.cmpf oeq, %54, %57 : vector<1x7xf32>
    %c7_i32 = arith.constant 7 : i32
    %59 = vector.broadcast %c7_i32 : i32 to vector<1x7xi32>
    %60 = arith.select %58, %10, %59 : vector<1x7xi1>, vector<1x7xi32>
    %cst_23 = arith.constant dense<2147483647> : vector<1xi32>
    %61 = vector.multi_reduction <minsi>, %60, %cst_23 [1] : vector<1x7xi32> to vector<1xi32>
    %62 = vector.shape_cast %61 : vector<1xi32> to vector<1x1xi32>
    %63 = vector.broadcast %62 : vector<1x1xi32> to vector<7x1xi32>
    %64 = arith.cmpi eq, %11, %63 : vector<7x1xi32>
    %65 = arith.extui %64 : vector<7x1xi1> to vector<7x1xi32>
    %66 = arith.sitofp %65 : vector<7x1xi32> to vector<7x1xf32>
    %67 = vector.broadcast %66 : vector<7x1xf32> to vector<7x128xf32>
    %68 = arith.mulf %67, %4 : vector<7x128xf32>
    %cst_24 = arith.constant dense<0.000000e+00> : vector<128xf32>
    %69 = vector.multi_reduction <add>, %68, %cst_24 [0] : vector<7x128xf32> to vector<128xf32>
    %70 = vector.shape_cast %69 : vector<128xf32> to vector<1x128xf32>
    %71 = arith.addf %70, %37 : vector<1x128xf32>
    %72 = arith.addf %71, %5 : vector<1x128xf32>
    %73 = arith.negf %72 : vector<1x128xf32>
    %74 = math.exp %73 : vector<1x128xf32>
    %cst_25 = arith.constant 1.000000e+00 : f32
    %75 = vector.broadcast %cst_25 : f32 to vector<1x128xf32>
    %76 = arith.addf %75, %74 : vector<1x128xf32>
    %77 = arith.divf %75, %76 : vector<1x128xf32>
    %78 = math.tanh %72 : vector<1x128xf32>
    %79 = vector.extract_strided_slice %77 {offsets = [0, 0], sizes = [1, 32], strides = [1, 1]} : vector<1x128xf32> to vector<1x32xf32>
    %80 = vector.extract_strided_slice %77 {offsets = [0, 32], sizes = [1, 32], strides = [1, 1]} : vector<1x128xf32> to vector<1x32xf32>
    %81 = vector.extract_strided_slice %78 {offsets = [0, 64], sizes = [1, 32], strides = [1, 1]} : vector<1x128xf32> to vector<1x32xf32>
    %82 = vector.extract_strided_slice %77 {offsets = [0, 96], sizes = [1, 32], strides = [1, 1]} : vector<1x128xf32> to vector<1x32xf32>
    %83 = arith.mulf %80, %30 : vector<1x32xf32>
    %84 = arith.mulf %79, %81 : vector<1x32xf32>
    %85 = arith.addf %83, %84 : vector<1x32xf32>
    %86 = math.tanh %85 : vector<1x32xf32>
    %87 = arith.mulf %82, %86 : vector<1x32xf32>
    %88 = tpu.concatenate %87, %52 in 1 : vector<1x32xf32>, vector<1x32xf32> -> vector<1x64xf32>
    %cst_26 = arith.constant dense<0.000000e+00> : vector<1x256xf32>
    %89 = tpu.matmul %88, %6, %cst_26 {dimension_numbers = #tpu.dot_dimension_numbers<[1], [0], [0], [1], [0, 0, 1, 1], [], []>} : vector<1x64xf32>, vector<64x256xf32>, vector<1x256xf32> -> vector<1x256xf32>
    %90 = vector.extract_strided_slice %89 {offsets = [0, 0], sizes = [1, 128], strides = [1, 1]} : vector<1x256xf32> to vector<1x128xf32>
    %91 = arith.addf %90, %7 : vector<1x128xf32>
    %92 = vector.extract_strided_slice %89 {offsets = [0, 128], sizes = [1, 128], strides = [1, 1]} : vector<1x256xf32> to vector<1x128xf32>
    %93 = arith.negf %91 : vector<1x128xf32>
    %94 = math.exp %93 : vector<1x128xf32>
    %cst_27 = arith.constant 1.000000e+00 : f32
    %95 = vector.broadcast %cst_27 : f32 to vector<1x128xf32>
    %96 = arith.addf %95, %94 : vector<1x128xf32>
    %97 = arith.divf %95, %96 : vector<1x128xf32>
    %98 = math.tanh %91 : vector<1x128xf32>
    %99 = vector.extract_strided_slice %97 {offsets = [0, 0], sizes = [1, 32], strides = [1, 1]} : vector<1x128xf32> to vector<1x32xf32>
    %100 = vector.extract_strided_slice %97 {offsets = [0, 32], sizes = [1, 32], strides = [1, 1]} : vector<1x128xf32> to vector<1x32xf32>
    %101 = vector.extract_strided_slice %98 {offsets = [0, 64], sizes = [1, 32], strides = [1, 1]} : vector<1x128xf32> to vector<1x32xf32>
    %102 = vector.extract_strided_slice %97 {offsets = [0, 96], sizes = [1, 32], strides = [1, 1]} : vector<1x128xf32> to vector<1x32xf32>
    %103 = arith.mulf %100, %50 : vector<1x32xf32>
    %104 = arith.mulf %99, %101 : vector<1x32xf32>
    %105 = arith.addf %103, %104 : vector<1x32xf32>
    %106 = math.tanh %105 : vector<1x32xf32>
    %107 = arith.mulf %102, %106 : vector<1x32xf32>
    %cst_28 = arith.constant dense<0.000000e+00> : vector<1x7xf32>
    %108 = tpu.matmul %107, %8, %cst_28 {dimension_numbers = #tpu.dot_dimension_numbers<[1], [0], [0], [1], [0, 0, 1, 1], [], []>} : vector<1x32xf32>, vector<32x7xf32>, vector<1x7xf32> -> vector<1x7xf32>
    %109 = arith.addf %108, %9 : vector<1x7xf32>
    %cst_29 = arith.constant dense<0xFF800000> : vector<1xf32>
    %110 = vector.multi_reduction <maximumf>, %109, %cst_29 [1] : vector<1x7xf32> to vector<1xf32>
    %111 = vector.shape_cast %110 : vector<1xf32> to vector<1x1xf32>
    %112 = vector.broadcast %111 : vector<1x1xf32> to vector<1x7xf32>
    %113 = arith.cmpf oeq, %109, %112 : vector<1x7xf32>
    %c7_i32_30 = arith.constant 7 : i32
    %114 = vector.broadcast %c7_i32_30 : i32 to vector<1x7xi32>
    %115 = arith.select %113, %10, %114 : vector<1x7xi1>, vector<1x7xi32>
    %cst_31 = arith.constant dense<2147483647> : vector<1xi32>
    %116 = vector.multi_reduction <minsi>, %115, %cst_31 [1] : vector<1x7xi32> to vector<1xi32>
    %117 = vector.shape_cast %116 : vector<1xi32> to vector<1x1xi32>
    %118 = vector.broadcast %117 : vector<1x1xi32> to vector<7x1xi32>
    %119 = arith.cmpi eq, %11, %118 : vector<7x1xi32>
    %120 = arith.extui %119 : vector<7x1xi1> to vector<7x1xi32>
    %121 = arith.sitofp %120 : vector<7x1xi32> to vector<7x1xf32>
    %122 = vector.broadcast %121 : vector<7x1xf32> to vector<7x128xf32>
    %123 = arith.mulf %122, %4 : vector<7x128xf32>
    %cst_32 = arith.constant dense<0.000000e+00> : vector<128xf32>
    %124 = vector.multi_reduction <add>, %123, %cst_32 [0] : vector<7x128xf32> to vector<128xf32>
    %125 = vector.shape_cast %124 : vector<128xf32> to vector<1x128xf32>
    %126 = arith.addf %125, %92 : vector<1x128xf32>
    %127 = arith.addf %126, %5 : vector<1x128xf32>
    %128 = arith.negf %127 : vector<1x128xf32>
    %129 = math.exp %128 : vector<1x128xf32>
    %cst_33 = arith.constant 1.000000e+00 : f32
    %130 = vector.broadcast %cst_33 : f32 to vector<1x128xf32>
    %131 = arith.addf %130, %129 : vector<1x128xf32>
    %132 = arith.divf %130, %131 : vector<1x128xf32>
    %133 = math.tanh %127 : vector<1x128xf32>
    %134 = vector.extract_strided_slice %132 {offsets = [0, 0], sizes = [1, 32], strides = [1, 1]} : vector<1x128xf32> to vector<1x32xf32>
    %135 = vector.extract_strided_slice %132 {offsets = [0, 32], sizes = [1, 32], strides = [1, 1]} : vector<1x128xf32> to vector<1x32xf32>
    %136 = vector.extract_strided_slice %133 {offsets = [0, 64], sizes = [1, 32], strides = [1, 1]} : vector<1x128xf32> to vector<1x32xf32>
    %137 = vector.extract_strided_slice %132 {offsets = [0, 96], sizes = [1, 32], strides = [1, 1]} : vector<1x128xf32> to vector<1x32xf32>
    %138 = arith.mulf %135, %85 : vector<1x32xf32>
    %139 = arith.mulf %134, %136 : vector<1x32xf32>
    %140 = arith.addf %138, %139 : vector<1x32xf32>
    %141 = math.tanh %140 : vector<1x32xf32>
    %142 = arith.mulf %137, %141 : vector<1x32xf32>
    %143 = tpu.concatenate %142, %107 in 1 : vector<1x32xf32>, vector<1x32xf32> -> vector<1x64xf32>
    %cst_34 = arith.constant dense<0.000000e+00> : vector<1x256xf32>
    %144 = tpu.matmul %143, %6, %cst_34 {dimension_numbers = #tpu.dot_dimension_numbers<[1], [0], [0], [1], [0, 0, 1, 1], [], []>} : vector<1x64xf32>, vector<64x256xf32>, vector<1x256xf32> -> vector<1x256xf32>
    %145 = vector.extract_strided_slice %144 {offsets = [0, 0], sizes = [1, 128], strides = [1, 1]} : vector<1x256xf32> to vector<1x128xf32>
    %146 = arith.addf %145, %7 : vector<1x128xf32>
    %147 = vector.extract_strided_slice %144 {offsets = [0, 128], sizes = [1, 128], strides = [1, 1]} : vector<1x256xf32> to vector<1x128xf32>
    %148 = arith.negf %146 : vector<1x128xf32>
    %149 = math.exp %148 : vector<1x128xf32>
    %cst_35 = arith.constant 1.000000e+00 : f32
    %150 = vector.broadcast %cst_35 : f32 to vector<1x128xf32>
    %151 = arith.addf %150, %149 : vector<1x128xf32>
    %152 = arith.divf %150, %151 : vector<1x128xf32>
    %153 = math.tanh %146 : vector<1x128xf32>
    %154 = vector.extract_strided_slice %152 {offsets = [0, 0], sizes = [1, 32], strides = [1, 1]} : vector<1x128xf32> to vector<1x32xf32>
    %155 = vector.extract_strided_slice %152 {offsets = [0, 32], sizes = [1, 32], strides = [1, 1]} : vector<1x128xf32> to vector<1x32xf32>
    %156 = vector.extract_strided_slice %153 {offsets = [0, 64], sizes = [1, 32], strides = [1, 1]} : vector<1x128xf32> to vector<1x32xf32>
    %157 = vector.extract_strided_slice %152 {offsets = [0, 96], sizes = [1, 32], strides = [1, 1]} : vector<1x128xf32> to vector<1x32xf32>
    %158 = arith.mulf %155, %105 : vector<1x32xf32>
    %159 = arith.mulf %154, %156 : vector<1x32xf32>
    %160 = arith.addf %158, %159 : vector<1x32xf32>
    %161 = math.tanh %160 : vector<1x32xf32>
    %162 = arith.mulf %157, %161 : vector<1x32xf32>
    %cst_36 = arith.constant dense<0.000000e+00> : vector<1x7xf32>
    %163 = tpu.matmul %162, %8, %cst_36 {dimension_numbers = #tpu.dot_dimension_numbers<[1], [0], [0], [1], [0, 0, 1, 1], [], []>} : vector<1x32xf32>, vector<32x7xf32>, vector<1x7xf32> -> vector<1x7xf32>
    %164 = arith.addf %163, %9 : vector<1x7xf32>
    %cst_37 = arith.constant dense<0xFF800000> : vector<1xf32>
    %165 = vector.multi_reduction <maximumf>, %164, %cst_37 [1] : vector<1x7xf32> to vector<1xf32>
    %166 = vector.shape_cast %165 : vector<1xf32> to vector<1x1xf32>
    %167 = vector.broadcast %166 : vector<1x1xf32> to vector<1x7xf32>
    %168 = arith.cmpf oeq, %164, %167 : vector<1x7xf32>
    %c7_i32_38 = arith.constant 7 : i32
    %169 = vector.broadcast %c7_i32_38 : i32 to vector<1x7xi32>
    %170 = arith.select %168, %10, %169 : vector<1x7xi1>, vector<1x7xi32>
    %cst_39 = arith.constant dense<2147483647> : vector<1xi32>
    %171 = vector.multi_reduction <minsi>, %170, %cst_39 [1] : vector<1x7xi32> to vector<1xi32>
    %172 = vector.shape_cast %171 : vector<1xi32> to vector<1x1xi32>
    %173 = vector.broadcast %172 : vector<1x1xi32> to vector<7x1xi32>
    %174 = arith.cmpi eq, %11, %173 : vector<7x1xi32>
    %175 = arith.extui %174 : vector<7x1xi1> to vector<7x1xi32>
    %176 = arith.sitofp %175 : vector<7x1xi32> to vector<7x1xf32>
    %177 = vector.broadcast %176 : vector<7x1xf32> to vector<7x128xf32>
    %178 = arith.mulf %177, %4 : vector<7x128xf32>
    %cst_40 = arith.constant dense<0.000000e+00> : vector<128xf32>
    %179 = vector.multi_reduction <add>, %178, %cst_40 [0] : vector<7x128xf32> to vector<128xf32>
    %180 = vector.shape_cast %179 : vector<128xf32> to vector<1x128xf32>
    %181 = arith.addf %180, %147 : vector<1x128xf32>
    %182 = arith.addf %181, %5 : vector<1x128xf32>
    %183 = arith.negf %182 : vector<1x128xf32>
    %184 = math.exp %183 : vector<1x128xf32>
    %cst_41 = arith.constant 1.000000e+00 : f32
    %185 = vector.broadcast %cst_41 : f32 to vector<1x128xf32>
    %186 = arith.addf %185, %184 : vector<1x128xf32>
    %187 = arith.divf %185, %186 : vector<1x128xf32>
    %188 = math.tanh %182 : vector<1x128xf32>
    %189 = vector.extract_strided_slice %187 {offsets = [0, 0], sizes = [1, 32], strides = [1, 1]} : vector<1x128xf32> to vector<1x32xf32>
    %190 = vector.extract_strided_slice %187 {offsets = [0, 32], sizes = [1, 32], strides = [1, 1]} : vector<1x128xf32> to vector<1x32xf32>
    %191 = vector.extract_strided_slice %188 {offsets = [0, 64], sizes = [1, 32], strides = [1, 1]} : vector<1x128xf32> to vector<1x32xf32>
    %192 = vector.extract_strided_slice %187 {offsets = [0, 96], sizes = [1, 32], strides = [1, 1]} : vector<1x128xf32> to vector<1x32xf32>
    %193 = arith.mulf %190, %140 : vector<1x32xf32>
    %194 = arith.mulf %189, %191 : vector<1x32xf32>
    %195 = arith.addf %193, %194 : vector<1x32xf32>
    %196 = math.tanh %195 : vector<1x32xf32>
    %197 = arith.mulf %192, %196 : vector<1x32xf32>
    %198 = tpu.concatenate %197, %162 in 1 : vector<1x32xf32>, vector<1x32xf32> -> vector<1x64xf32>
    %cst_42 = arith.constant dense<0.000000e+00> : vector<1x256xf32>
    %199 = tpu.matmul %198, %6, %cst_42 {dimension_numbers = #tpu.dot_dimension_numbers<[1], [0], [0], [1], [0, 0, 1, 1], [], []>} : vector<1x64xf32>, vector<64x256xf32>, vector<1x256xf32> -> vector<1x256xf32>
    %200 = vector.extract_strided_slice %199 {offsets = [0, 0], sizes = [1, 128], strides = [1, 1]} : vector<1x256xf32> to vector<1x128xf32>
    %201 = arith.addf %200, %7 : vector<1x128xf32>
    %202 = vector.extract_strided_slice %199 {offsets = [0, 128], sizes = [1, 128], strides = [1, 1]} : vector<1x256xf32> to vector<1x128xf32>
    %203 = arith.negf %201 : vector<1x128xf32>
    %204 = math.exp %203 : vector<1x128xf32>
    %cst_43 = arith.constant 1.000000e+00 : f32
    %205 = vector.broadcast %cst_43 : f32 to vector<1x128xf32>
    %206 = arith.addf %205, %204 : vector<1x128xf32>
    %207 = arith.divf %205, %206 : vector<1x128xf32>
    %208 = math.tanh %201 : vector<1x128xf32>
    %209 = vector.extract_strided_slice %207 {offsets = [0, 0], sizes = [1, 32], strides = [1, 1]} : vector<1x128xf32> to vector<1x32xf32>
    %210 = vector.extract_strided_slice %207 {offsets = [0, 32], sizes = [1, 32], strides = [1, 1]} : vector<1x128xf32> to vector<1x32xf32>
    %211 = vector.extract_strided_slice %208 {offsets = [0, 64], sizes = [1, 32], strides = [1, 1]} : vector<1x128xf32> to vector<1x32xf32>
    %212 = vector.extract_strided_slice %207 {offsets = [0, 96], sizes = [1, 32], strides = [1, 1]} : vector<1x128xf32> to vector<1x32xf32>
    %213 = arith.mulf %210, %160 : vector<1x32xf32>
    %214 = arith.mulf %209, %211 : vector<1x32xf32>
    %215 = arith.addf %213, %214 : vector<1x32xf32>
    %216 = math.tanh %215 : vector<1x32xf32>
    %217 = arith.mulf %212, %216 : vector<1x32xf32>
    %cst_44 = arith.constant dense<0.000000e+00> : vector<1x7xf32>
    %218 = tpu.matmul %217, %8, %cst_44 {dimension_numbers = #tpu.dot_dimension_numbers<[1], [0], [0], [1], [0, 0, 1, 1], [], []>} : vector<1x32xf32>, vector<32x7xf32>, vector<1x7xf32> -> vector<1x7xf32>
    %219 = arith.addf %218, %9 : vector<1x7xf32>
    %cst_45 = arith.constant dense<0xFF800000> : vector<1xf32>
    %220 = vector.multi_reduction <maximumf>, %219, %cst_45 [1] : vector<1x7xf32> to vector<1xf32>
    %221 = vector.shape_cast %220 : vector<1xf32> to vector<1x1xf32>
    %222 = vector.broadcast %221 : vector<1x1xf32> to vector<1x7xf32>
    %223 = arith.cmpf oeq, %219, %222 : vector<1x7xf32>
    %c7_i32_46 = arith.constant 7 : i32
    %224 = vector.broadcast %c7_i32_46 : i32 to vector<1x7xi32>
    %225 = arith.select %223, %10, %224 : vector<1x7xi1>, vector<1x7xi32>
    %cst_47 = arith.constant dense<2147483647> : vector<1xi32>
    %226 = vector.multi_reduction <minsi>, %225, %cst_47 [1] : vector<1x7xi32> to vector<1xi32>
    %227 = vector.shape_cast %226 : vector<1xi32> to vector<1x1xi32>
    %228 = vector.broadcast %227 : vector<1x1xi32> to vector<7x1xi32>
    %229 = arith.cmpi eq, %11, %228 : vector<7x1xi32>
    %230 = arith.extui %229 : vector<7x1xi1> to vector<7x1xi32>
    %231 = arith.sitofp %230 : vector<7x1xi32> to vector<7x1xf32>
    %232 = vector.broadcast %231 : vector<7x1xf32> to vector<7x128xf32>
    %233 = arith.mulf %232, %4 : vector<7x128xf32>
    %cst_48 = arith.constant dense<0.000000e+00> : vector<128xf32>
    %234 = vector.multi_reduction <add>, %233, %cst_48 [0] : vector<7x128xf32> to vector<128xf32>
    %235 = vector.shape_cast %234 : vector<128xf32> to vector<1x128xf32>
    %236 = arith.addf %235, %202 : vector<1x128xf32>
    %237 = arith.addf %236, %5 : vector<1x128xf32>
    %238 = arith.negf %237 : vector<1x128xf32>
    %239 = math.exp %238 : vector<1x128xf32>
    %cst_49 = arith.constant 1.000000e+00 : f32
    %240 = vector.broadcast %cst_49 : f32 to vector<1x128xf32>
    %241 = arith.addf %240, %239 : vector<1x128xf32>
    %242 = arith.divf %240, %241 : vector<1x128xf32>
    %243 = math.tanh %237 : vector<1x128xf32>
    %244 = vector.extract_strided_slice %242 {offsets = [0, 0], sizes = [1, 32], strides = [1, 1]} : vector<1x128xf32> to vector<1x32xf32>
    %245 = vector.extract_strided_slice %242 {offsets = [0, 32], sizes = [1, 32], strides = [1, 1]} : vector<1x128xf32> to vector<1x32xf32>
    %246 = vector.extract_strided_slice %243 {offsets = [0, 64], sizes = [1, 32], strides = [1, 1]} : vector<1x128xf32> to vector<1x32xf32>
    %247 = vector.extract_strided_slice %242 {offsets = [0, 96], sizes = [1, 32], strides = [1, 1]} : vector<1x128xf32> to vector<1x32xf32>
    %248 = arith.mulf %245, %195 : vector<1x32xf32>
    %249 = arith.mulf %244, %246 : vector<1x32xf32>
    %250 = arith.addf %248, %249 : vector<1x32xf32>
    %251 = math.tanh %250 : vector<1x32xf32>
    %252 = arith.mulf %247, %251 : vector<1x32xf32>
    %253 = tpu.concatenate %252, %217 in 1 : vector<1x32xf32>, vector<1x32xf32> -> vector<1x64xf32>
    %cst_50 = arith.constant dense<0.000000e+00> : vector<1x256xf32>
    %254 = tpu.matmul %253, %6, %cst_50 {dimension_numbers = #tpu.dot_dimension_numbers<[1], [0], [0], [1], [0, 0, 1, 1], [], []>} : vector<1x64xf32>, vector<64x256xf32>, vector<1x256xf32> -> vector<1x256xf32>
    %255 = vector.extract_strided_slice %254 {offsets = [0, 0], sizes = [1, 128], strides = [1, 1]} : vector<1x256xf32> to vector<1x128xf32>
    %256 = arith.addf %255, %7 : vector<1x128xf32>
    %257 = vector.extract_strided_slice %254 {offsets = [0, 128], sizes = [1, 128], strides = [1, 1]} : vector<1x256xf32> to vector<1x128xf32>
    %258 = arith.negf %256 : vector<1x128xf32>
    %259 = math.exp %258 : vector<1x128xf32>
    %cst_51 = arith.constant 1.000000e+00 : f32
    %260 = vector.broadcast %cst_51 : f32 to vector<1x128xf32>
    %261 = arith.addf %260, %259 : vector<1x128xf32>
    %262 = arith.divf %260, %261 : vector<1x128xf32>
    %263 = math.tanh %256 : vector<1x128xf32>
    %264 = vector.extract_strided_slice %262 {offsets = [0, 0], sizes = [1, 32], strides = [1, 1]} : vector<1x128xf32> to vector<1x32xf32>
    %265 = vector.extract_strided_slice %262 {offsets = [0, 32], sizes = [1, 32], strides = [1, 1]} : vector<1x128xf32> to vector<1x32xf32>
    %266 = vector.extract_strided_slice %263 {offsets = [0, 64], sizes = [1, 32], strides = [1, 1]} : vector<1x128xf32> to vector<1x32xf32>
    %267 = vector.extract_strided_slice %262 {offsets = [0, 96], sizes = [1, 32], strides = [1, 1]} : vector<1x128xf32> to vector<1x32xf32>
    %268 = arith.mulf %265, %215 : vector<1x32xf32>
    %269 = arith.mulf %264, %266 : vector<1x32xf32>
    %270 = arith.addf %268, %269 : vector<1x32xf32>
    %271 = math.tanh %270 : vector<1x32xf32>
    %272 = arith.mulf %267, %271 : vector<1x32xf32>
    %cst_52 = arith.constant dense<0.000000e+00> : vector<1x7xf32>
    %273 = tpu.matmul %272, %8, %cst_52 {dimension_numbers = #tpu.dot_dimension_numbers<[1], [0], [0], [1], [0, 0, 1, 1], [], []>} : vector<1x32xf32>, vector<32x7xf32>, vector<1x7xf32> -> vector<1x7xf32>
    %274 = arith.addf %273, %9 : vector<1x7xf32>
    %cst_53 = arith.constant dense<0xFF800000> : vector<1xf32>
    %275 = vector.multi_reduction <maximumf>, %274, %cst_53 [1] : vector<1x7xf32> to vector<1xf32>
    %276 = vector.shape_cast %275 : vector<1xf32> to vector<1x1xf32>
    %277 = vector.broadcast %276 : vector<1x1xf32> to vector<1x7xf32>
    %278 = arith.cmpf oeq, %274, %277 : vector<1x7xf32>
    %c7_i32_54 = arith.constant 7 : i32
    %279 = vector.broadcast %c7_i32_54 : i32 to vector<1x7xi32>
    %280 = arith.select %278, %10, %279 : vector<1x7xi1>, vector<1x7xi32>
    %cst_55 = arith.constant dense<2147483647> : vector<1xi32>
    %281 = vector.multi_reduction <minsi>, %280, %cst_55 [1] : vector<1x7xi32> to vector<1xi32>
    %282 = vector.shape_cast %281 : vector<1xi32> to vector<1x1xi32>
    %283 = vector.broadcast %282 : vector<1x1xi32> to vector<7x1xi32>
    %284 = arith.cmpi eq, %11, %283 : vector<7x1xi32>
    %285 = arith.extui %284 : vector<7x1xi1> to vector<7x1xi32>
    %286 = arith.sitofp %285 : vector<7x1xi32> to vector<7x1xf32>
    %287 = vector.broadcast %286 : vector<7x1xf32> to vector<7x128xf32>
    %288 = arith.mulf %287, %4 : vector<7x128xf32>
    %cst_56 = arith.constant dense<0.000000e+00> : vector<128xf32>
    %289 = vector.multi_reduction <add>, %288, %cst_56 [0] : vector<7x128xf32> to vector<128xf32>
    %290 = vector.shape_cast %289 : vector<128xf32> to vector<1x128xf32>
    %291 = arith.addf %290, %257 : vector<1x128xf32>
    %292 = arith.addf %291, %5 : vector<1x128xf32>
    %293 = arith.negf %292 : vector<1x128xf32>
    %294 = math.exp %293 : vector<1x128xf32>
    %cst_57 = arith.constant 1.000000e+00 : f32
    %295 = vector.broadcast %cst_57 : f32 to vector<1x128xf32>
    %296 = arith.addf %295, %294 : vector<1x128xf32>
    %297 = arith.divf %295, %296 : vector<1x128xf32>
    %298 = math.tanh %292 : vector<1x128xf32>
    %299 = vector.extract_strided_slice %297 {offsets = [0, 0], sizes = [1, 32], strides = [1, 1]} : vector<1x128xf32> to vector<1x32xf32>
    %300 = vector.extract_strided_slice %297 {offsets = [0, 32], sizes = [1, 32], strides = [1, 1]} : vector<1x128xf32> to vector<1x32xf32>
    %301 = vector.extract_strided_slice %298 {offsets = [0, 64], sizes = [1, 32], strides = [1, 1]} : vector<1x128xf32> to vector<1x32xf32>
    %302 = vector.extract_strided_slice %297 {offsets = [0, 96], sizes = [1, 32], strides = [1, 1]} : vector<1x128xf32> to vector<1x32xf32>
    %303 = arith.mulf %300, %250 : vector<1x32xf32>
    %304 = arith.mulf %299, %301 : vector<1x32xf32>
    %305 = arith.addf %303, %304 : vector<1x32xf32>
    %306 = math.tanh %305 : vector<1x32xf32>
    %307 = arith.mulf %302, %306 : vector<1x32xf32>
    %308 = tpu.concatenate %307, %272 in 1 : vector<1x32xf32>, vector<1x32xf32> -> vector<1x64xf32>
    %cst_58 = arith.constant dense<0.000000e+00> : vector<1x256xf32>
    %309 = tpu.matmul %308, %6, %cst_58 {dimension_numbers = #tpu.dot_dimension_numbers<[1], [0], [0], [1], [0, 0, 1, 1], [], []>} : vector<1x64xf32>, vector<64x256xf32>, vector<1x256xf32> -> vector<1x256xf32>
    %310 = vector.extract_strided_slice %309 {offsets = [0, 0], sizes = [1, 128], strides = [1, 1]} : vector<1x256xf32> to vector<1x128xf32>
    %311 = arith.addf %310, %7 : vector<1x128xf32>
    %312 = vector.extract_strided_slice %309 {offsets = [0, 128], sizes = [1, 128], strides = [1, 1]} : vector<1x256xf32> to vector<1x128xf32>
    %313 = arith.negf %311 : vector<1x128xf32>
    %314 = math.exp %313 : vector<1x128xf32>
    %cst_59 = arith.constant 1.000000e+00 : f32
    %315 = vector.broadcast %cst_59 : f32 to vector<1x128xf32>
    %316 = arith.addf %315, %314 : vector<1x128xf32>
    %317 = arith.divf %315, %316 : vector<1x128xf32>
    %318 = math.tanh %311 : vector<1x128xf32>
    %319 = vector.extract_strided_slice %317 {offsets = [0, 0], sizes = [1, 32], strides = [1, 1]} : vector<1x128xf32> to vector<1x32xf32>
    %320 = vector.extract_strided_slice %317 {offsets = [0, 32], sizes = [1, 32], strides = [1, 1]} : vector<1x128xf32> to vector<1x32xf32>
    %321 = vector.extract_strided_slice %318 {offsets = [0, 64], sizes = [1, 32], strides = [1, 1]} : vector<1x128xf32> to vector<1x32xf32>
    %322 = vector.extract_strided_slice %317 {offsets = [0, 96], sizes = [1, 32], strides = [1, 1]} : vector<1x128xf32> to vector<1x32xf32>
    %323 = arith.mulf %320, %270 : vector<1x32xf32>
    %324 = arith.mulf %319, %321 : vector<1x32xf32>
    %325 = arith.addf %323, %324 : vector<1x32xf32>
    %326 = math.tanh %325 : vector<1x32xf32>
    %327 = arith.mulf %322, %326 : vector<1x32xf32>
    %cst_60 = arith.constant dense<0.000000e+00> : vector<1x7xf32>
    %328 = tpu.matmul %327, %8, %cst_60 {dimension_numbers = #tpu.dot_dimension_numbers<[1], [0], [0], [1], [0, 0, 1, 1], [], []>} : vector<1x32xf32>, vector<32x7xf32>, vector<1x7xf32> -> vector<1x7xf32>
    %329 = arith.addf %328, %9 : vector<1x7xf32>
    %cst_61 = arith.constant dense<0xFF800000> : vector<1xf32>
    %330 = vector.multi_reduction <maximumf>, %329, %cst_61 [1] : vector<1x7xf32> to vector<1xf32>
    %331 = vector.shape_cast %330 : vector<1xf32> to vector<1x1xf32>
    %332 = vector.broadcast %331 : vector<1x1xf32> to vector<1x7xf32>
    %333 = arith.cmpf oeq, %329, %332 : vector<1x7xf32>
    %c7_i32_62 = arith.constant 7 : i32
    %334 = vector.broadcast %c7_i32_62 : i32 to vector<1x7xi32>
    %335 = arith.select %333, %10, %334 : vector<1x7xi1>, vector<1x7xi32>
    %cst_63 = arith.constant dense<2147483647> : vector<1xi32>
    %336 = vector.multi_reduction <minsi>, %335, %cst_63 [1] : vector<1x7xi32> to vector<1xi32>
    %337 = vector.shape_cast %336 : vector<1xi32> to vector<1x1xi32>
    %338 = vector.broadcast %337 : vector<1x1xi32> to vector<7x1xi32>
    %339 = arith.cmpi eq, %11, %338 : vector<7x1xi32>
    %340 = arith.extui %339 : vector<7x1xi1> to vector<7x1xi32>
    %341 = arith.sitofp %340 : vector<7x1xi32> to vector<7x1xf32>
    %342 = vector.broadcast %341 : vector<7x1xf32> to vector<7x128xf32>
    %343 = arith.mulf %342, %4 : vector<7x128xf32>
    %cst_64 = arith.constant dense<0.000000e+00> : vector<128xf32>
    %344 = vector.multi_reduction <add>, %343, %cst_64 [0] : vector<7x128xf32> to vector<128xf32>
    %345 = vector.shape_cast %344 : vector<128xf32> to vector<1x128xf32>
    %346 = arith.addf %345, %312 : vector<1x128xf32>
    %347 = arith.addf %346, %5 : vector<1x128xf32>
    %348 = arith.negf %347 : vector<1x128xf32>
    %349 = math.exp %348 : vector<1x128xf32>
    %cst_65 = arith.constant 1.000000e+00 : f32
    %350 = vector.broadcast %cst_65 : f32 to vector<1x128xf32>
    %351 = arith.addf %350, %349 : vector<1x128xf32>
    %352 = arith.divf %350, %351 : vector<1x128xf32>
    %353 = math.tanh %347 : vector<1x128xf32>
    %354 = vector.extract_strided_slice %352 {offsets = [0, 0], sizes = [1, 32], strides = [1, 1]} : vector<1x128xf32> to vector<1x32xf32>
    %355 = vector.extract_strided_slice %352 {offsets = [0, 32], sizes = [1, 32], strides = [1, 1]} : vector<1x128xf32> to vector<1x32xf32>
    %356 = vector.extract_strided_slice %353 {offsets = [0, 64], sizes = [1, 32], strides = [1, 1]} : vector<1x128xf32> to vector<1x32xf32>
    %357 = vector.extract_strided_slice %352 {offsets = [0, 96], sizes = [1, 32], strides = [1, 1]} : vector<1x128xf32> to vector<1x32xf32>
    %358 = arith.mulf %355, %305 : vector<1x32xf32>
    %359 = arith.mulf %354, %356 : vector<1x32xf32>
    %360 = arith.addf %358, %359 : vector<1x32xf32>
    %361 = math.tanh %360 : vector<1x32xf32>
    %362 = arith.mulf %357, %361 : vector<1x32xf32>
    %363 = tpu.concatenate %362, %327 in 1 : vector<1x32xf32>, vector<1x32xf32> -> vector<1x64xf32>
    %cst_66 = arith.constant dense<0.000000e+00> : vector<1x256xf32>
    %364 = tpu.matmul %363, %6, %cst_66 {dimension_numbers = #tpu.dot_dimension_numbers<[1], [0], [0], [1], [0, 0, 1, 1], [], []>} : vector<1x64xf32>, vector<64x256xf32>, vector<1x256xf32> -> vector<1x256xf32>
    %365 = vector.extract_strided_slice %364 {offsets = [0, 0], sizes = [1, 128], strides = [1, 1]} : vector<1x256xf32> to vector<1x128xf32>
    %366 = arith.addf %365, %7 : vector<1x128xf32>
    %367 = vector.extract_strided_slice %364 {offsets = [0, 128], sizes = [1, 128], strides = [1, 1]} : vector<1x256xf32> to vector<1x128xf32>
    %368 = arith.negf %366 : vector<1x128xf32>
    %369 = math.exp %368 : vector<1x128xf32>
    %cst_67 = arith.constant 1.000000e+00 : f32
    %370 = vector.broadcast %cst_67 : f32 to vector<1x128xf32>
    %371 = arith.addf %370, %369 : vector<1x128xf32>
    %372 = arith.divf %370, %371 : vector<1x128xf32>
    %373 = math.tanh %366 : vector<1x128xf32>
    %374 = vector.extract_strided_slice %372 {offsets = [0, 0], sizes = [1, 32], strides = [1, 1]} : vector<1x128xf32> to vector<1x32xf32>
    %375 = vector.extract_strided_slice %372 {offsets = [0, 32], sizes = [1, 32], strides = [1, 1]} : vector<1x128xf32> to vector<1x32xf32>
    %376 = vector.extract_strided_slice %373 {offsets = [0, 64], sizes = [1, 32], strides = [1, 1]} : vector<1x128xf32> to vector<1x32xf32>
    %377 = vector.extract_strided_slice %372 {offsets = [0, 96], sizes = [1, 32], strides = [1, 1]} : vector<1x128xf32> to vector<1x32xf32>
    %378 = arith.mulf %375, %325 : vector<1x32xf32>
    %379 = arith.mulf %374, %376 : vector<1x32xf32>
    %380 = arith.addf %378, %379 : vector<1x32xf32>
    %381 = math.tanh %380 : vector<1x32xf32>
    %382 = arith.mulf %377, %381 : vector<1x32xf32>
    %cst_68 = arith.constant dense<0.000000e+00> : vector<1x7xf32>
    %383 = tpu.matmul %382, %8, %cst_68 {dimension_numbers = #tpu.dot_dimension_numbers<[1], [0], [0], [1], [0, 0, 1, 1], [], []>} : vector<1x32xf32>, vector<32x7xf32>, vector<1x7xf32> -> vector<1x7xf32>
    %384 = arith.addf %383, %9 : vector<1x7xf32>
    %cst_69 = arith.constant dense<0xFF800000> : vector<1xf32>
    %385 = vector.multi_reduction <maximumf>, %384, %cst_69 [1] : vector<1x7xf32> to vector<1xf32>
    %386 = vector.shape_cast %385 : vector<1xf32> to vector<1x1xf32>
    %387 = vector.broadcast %386 : vector<1x1xf32> to vector<1x7xf32>
    %388 = arith.cmpf oeq, %384, %387 : vector<1x7xf32>
    %c7_i32_70 = arith.constant 7 : i32
    %389 = vector.broadcast %c7_i32_70 : i32 to vector<1x7xi32>
    %390 = arith.select %388, %10, %389 : vector<1x7xi1>, vector<1x7xi32>
    %cst_71 = arith.constant dense<2147483647> : vector<1xi32>
    %391 = vector.multi_reduction <minsi>, %390, %cst_71 [1] : vector<1x7xi32> to vector<1xi32>
    %392 = vector.shape_cast %391 : vector<1xi32> to vector<1x1xi32>
    %393 = vector.broadcast %392 : vector<1x1xi32> to vector<7x1xi32>
    %394 = arith.cmpi eq, %11, %393 : vector<7x1xi32>
    %395 = arith.extui %394 : vector<7x1xi1> to vector<7x1xi32>
    %396 = arith.sitofp %395 : vector<7x1xi32> to vector<7x1xf32>
    %397 = vector.broadcast %396 : vector<7x1xf32> to vector<7x128xf32>
    %398 = arith.mulf %397, %4 : vector<7x128xf32>
    %cst_72 = arith.constant dense<0.000000e+00> : vector<128xf32>
    %399 = vector.multi_reduction <add>, %398, %cst_72 [0] : vector<7x128xf32> to vector<128xf32>
    %400 = vector.shape_cast %399 : vector<128xf32> to vector<1x128xf32>
    %401 = arith.addf %400, %367 : vector<1x128xf32>
    %402 = arith.addf %401, %5 : vector<1x128xf32>
    %403 = arith.negf %402 : vector<1x128xf32>
    %404 = math.exp %403 : vector<1x128xf32>
    %cst_73 = arith.constant 1.000000e+00 : f32
    %405 = vector.broadcast %cst_73 : f32 to vector<1x128xf32>
    %406 = arith.addf %405, %404 : vector<1x128xf32>
    %407 = arith.divf %405, %406 : vector<1x128xf32>
    %408 = math.tanh %402 : vector<1x128xf32>
    %409 = vector.extract_strided_slice %407 {offsets = [0, 0], sizes = [1, 32], strides = [1, 1]} : vector<1x128xf32> to vector<1x32xf32>
    %410 = vector.extract_strided_slice %407 {offsets = [0, 32], sizes = [1, 32], strides = [1, 1]} : vector<1x128xf32> to vector<1x32xf32>
    %411 = vector.extract_strided_slice %408 {offsets = [0, 64], sizes = [1, 32], strides = [1, 1]} : vector<1x128xf32> to vector<1x32xf32>
    %412 = vector.extract_strided_slice %407 {offsets = [0, 96], sizes = [1, 32], strides = [1, 1]} : vector<1x128xf32> to vector<1x32xf32>
    %413 = arith.mulf %410, %360 : vector<1x32xf32>
    %414 = arith.mulf %409, %411 : vector<1x32xf32>
    %415 = arith.addf %413, %414 : vector<1x32xf32>
    %416 = math.tanh %415 : vector<1x32xf32>
    %417 = arith.mulf %412, %416 : vector<1x32xf32>
    %418 = tpu.concatenate %417, %382 in 1 : vector<1x32xf32>, vector<1x32xf32> -> vector<1x64xf32>
    %cst_74 = arith.constant dense<0.000000e+00> : vector<1x256xf32>
    %419 = tpu.matmul %418, %6, %cst_74 {dimension_numbers = #tpu.dot_dimension_numbers<[1], [0], [0], [1], [0, 0, 1, 1], [], []>} : vector<1x64xf32>, vector<64x256xf32>, vector<1x256xf32> -> vector<1x256xf32>
    %420 = vector.extract_strided_slice %419 {offsets = [0, 0], sizes = [1, 128], strides = [1, 1]} : vector<1x256xf32> to vector<1x128xf32>
    %421 = arith.addf %420, %7 : vector<1x128xf32>
    %422 = arith.negf %421 : vector<1x128xf32>
    %423 = math.exp %422 : vector<1x128xf32>
    %cst_75 = arith.constant 1.000000e+00 : f32
    %424 = vector.broadcast %cst_75 : f32 to vector<1x128xf32>
    %425 = arith.addf %424, %423 : vector<1x128xf32>
    %426 = arith.divf %424, %425 : vector<1x128xf32>
    %427 = math.tanh %421 : vector<1x128xf32>
    %428 = vector.extract_strided_slice %426 {offsets = [0, 0], sizes = [1, 32], strides = [1, 1]} : vector<1x128xf32> to vector<1x32xf32>
    %429 = vector.extract_strided_slice %426 {offsets = [0, 32], sizes = [1, 32], strides = [1, 1]} : vector<1x128xf32> to vector<1x32xf32>
    %430 = vector.extract_strided_slice %427 {offsets = [0, 64], sizes = [1, 32], strides = [1, 1]} : vector<1x128xf32> to vector<1x32xf32>
    %431 = vector.extract_strided_slice %426 {offsets = [0, 96], sizes = [1, 32], strides = [1, 1]} : vector<1x128xf32> to vector<1x32xf32>
    %432 = arith.mulf %429, %380 : vector<1x32xf32>
    %433 = arith.mulf %428, %430 : vector<1x32xf32>
    %434 = arith.addf %432, %433 : vector<1x32xf32>
    %435 = math.tanh %434 : vector<1x32xf32>
    %436 = arith.mulf %431, %435 : vector<1x32xf32>
    %cst_76 = arith.constant dense<0.000000e+00> : vector<1x7xf32>
    %437 = tpu.matmul %436, %8, %cst_76 {dimension_numbers = #tpu.dot_dimension_numbers<[1], [0], [0], [1], [0, 0, 1, 1], [], []>} : vector<1x32xf32>, vector<32x7xf32>, vector<1x7xf32> -> vector<1x7xf32>
    %438 = arith.addf %437, %9 : vector<1x7xf32>
    %439 = tpu.concatenate %54, %109, %164, %219, %274, %329, %384, %438 in 0 : vector<1x7xf32>, vector<1x7xf32>, vector<1x7xf32>, vector<1x7xf32>, vector<1x7xf32>, vector<1x7xf32>, vector<1x7xf32>, vector<1x7xf32> -> vector<8x7xf32>
    %cst_77 = arith.constant dense<0xFF800000> : vector<8xf32>
    %440 = vector.multi_reduction <maximumf>, %439, %cst_77 [1] : vector<8x7xf32> to vector<8xf32>
    %441 = vector.shape_cast %440 : vector<8xf32> to vector<8x1xf32>
    %442 = vector.broadcast %441 : vector<8x1xf32> to vector<8x7xf32>
    %443 = arith.subf %439, %442 : vector<8x7xf32>
    %444 = math.exp %443 : vector<8x7xf32>
    %cst_78 = arith.constant dense<0.000000e+00> : vector<8xf32>
    %445 = vector.multi_reduction <add>, %444, %cst_78 [1] : vector<8x7xf32> to vector<8xf32>
    %446 = vector.shape_cast %445 : vector<8xf32> to vector<8x1xf32>
    %447 = math.log %446 : vector<8x1xf32>
    %448 = vector.broadcast %447 : vector<8x1xf32> to vector<8x7xf32>
    %449 = arith.subf %443, %448 : vector<8x7xf32>
    %c0_79 = arith.constant 0 : index
    %c0_80 = arith.constant 0 : index
    %450 = vector.load %arg8[%c0_79, %c0_80] : memref<8x7xf32, #tpu.memory_space<vmem>>, vector<8x7xf32>
    tpu.vector_store %arg8[%c0_79, %c0_80], %449 {strides = array<i32>} : memref<8x7xf32, #tpu.memory_space<vmem>>, vector<8x7xf32>,
    %451 = tpu.concatenate %417, %436 in 0 : vector<1x32xf32>, vector<1x32xf32> -> vector<2x32xf32>
    %c0_81 = arith.constant 0 : index
    %c0_82 = arith.constant 0 : index
    %452 = vector.load %arg9[%c0_81, %c0_82] : memref<2x32xf32, #tpu.memory_space<vmem>>, vector<2x32xf32>
    tpu.vector_store %arg9[%c0_81, %c0_82], %451 {strides = array<i32>} : memref<2x32xf32, #tpu.memory_space<vmem>>, vector<2x32xf32>,
    %453 = tpu.concatenate %415, %434 in 0 : vector<1x32xf32>, vector<1x32xf32> -> vector<2x32xf32>
    %c0_83 = arith.constant 0 : index
    %c0_84 = arith.constant 0 : index
    %454 = vector.load %arg10[%c0_83, %c0_84] : memref<2x32xf32, #tpu.memory_space<vmem>>, vector<2x32xf32>
    tpu.vector_store %arg10[%c0_83, %c0_84], %453 {strides = array<i32>} : memref<2x32xf32, #tpu.memory_space<vmem>>, vector<2x32xf32>,
    return
  }
}

</mosaic_0001>

<bundles_post_ra>
// kernel: decoder_rnn.1
= control target key start
LH: loop header
LB: loop body
LE: loop exit
PB: predicated region body
PF: predicated region fallthrough
CT: control target
= control target key end

     0   :  { %16 = vsyncpa [#allocation3], 0  ;;  %s2761_s19 = smov 32   ;;  %v2762_v11 = vmov 0.0   ;;  %s3472_s0 = inlined_call_operand.vmem [shape: f32[2,32], index: 0, kind: input, shape index: {}]   ;;  %s3473_s1 = inlined_call_operand.vmem [shape: f32[2,32], index: 1, kind: input, shape index: {}]   ;;  %s3474_s2 = inlined_call_operand.vmem [shape: f32[7,128], index: 2, kind: input, shape index: {}]   ;;  %s3475_s3 = inlined_call_operand.vmem [shape: f32[1,128], index: 3, kind: input, shape index: {}]   ;;  %s3476_s4 = inlined_call_operand.vmem [shape: f32[64,256], index: 4, kind: input, shape index: {}]   ;;  %s3477_s5 = inlined_call_operand.vmem [shape: f32[1,128], index: 5, kind: input, shape index: {}]   ;;  %s3478_s6 = inlined_call_operand.vmem [shape: f32[32,7], index: 6, kind: input, shape index: {}]   ;;  %s3479_s7 = inlined_call_operand.vmem [shape: f32[1,7], index: 7, kind: input, shape index: {}]   ;;  %s3480_s8 = inlined_call_operand.hbm [shape: f32[8,7], index: 8, kind: output, shape index: {0}]   ;;  %s3481_s9 = inlined_call_operand.hbm [shape: f32[2,32], index: 9, kind: output, shape index: {1}]   ;;  %s3482_s10 = inlined_call_operand.hbm [shape: f32[2,32], index: 10, kind: output, shape index: {2}]  }
   0x1   :  { %v2828_v0 = vld [vmem:[%s3472_s0 + $0x1] sm:$0x1]  ;;  %v41_v1 = vld [vmem:[%s3476_s4 + $0x8] sm:$0xff]  ;;  %v43_v2 = vld [vmem:[%s3476_s4 + $0x18] sm:$0xff]  ;;  %140 = vmatprep.mubr.f32.mxu0 %v2762_v11  ;;  %263 = vmatprep.mubr.f32.mxu1 %v2762_v11 }
   0x2   :  { %67 = vrot.lane.b32.xlu0 %v2828_v0, %s2761_s19  ;;  %v2838_v3 = vpack.c.bf16 %v43_v2, %v41_v1  ;;  %v40_v4 = vld [vmem:[%s3476_s4] sm:$0xff]  ;;  %v42_v5 = vld [vmem:[%s3476_s4 + $0x10] sm:$0xff]  ;;  %v45_v6 = vld [vmem:[%s3476_s4 + $0x28] sm:$0xff] }
   0x3   :  { %v2849_v7 = vpack.c.bf16 %v42_v5, %v40_v4  ;;  %v47_v8 = vld [vmem:[%s3476_s4 + $0x38] sm:$0xff]  ;;  %v44_v9 = vld [vmem:[%s3476_s4 + $0x20] sm:$0xff]  ;;  %v46_v10 = vld [vmem:[%s3476_s4 + $0x30] sm:$0xff] }
   0x4   :  { %2355 = vmatprep.subr.bf16.mxu0 %v2838_v3  ;;  %v2863_v12 = vpack.c.bf16 %v47_v8, %v45_v6  ;;  %v49_v13 = vld [vmem:[%s3476_s4 + $0x48] sm:$0xff]  ;;  %v51_v14 = vld [vmem:[%s3476_s4 + $0x58] sm:$0xff]  ;;  %2371 = vmatprep.subr.bf16.mxu1 %v2838_v3  ;;  %v2873_v15 = vpack.c.bf16 %v46_v10, %v44_v9  ;;  %v48_v17 = vld [vmem:[%s3476_s4 + $0x40] sm:$0xff] }
   0x5   :  { %2357 = vmatpush1.bf16.msra.mxu0 %v2849_v7  ;;  %2373 = vmatpush1.bf16.msra.mxu1 %v2849_v7  ;;  %v2877_v16 = vpack.c.bf16 %v51_v14, %v49_v13  ;;  %v50_v18 = vld [vmem:[%s3476_s4 + $0x50] sm:$0xff]  ;;  %v53_v19 = vld [vmem:[%s3476_s4 + $0x68] sm:$0xff]  ;;  %v55_v20 = vld [vmem:[%s3476_s4 + $0x78] sm:$0xff] }
   0x6   :  { %2359 = vmatprep.subr.bf16.mxu0 %v2863_v12  ;;  %2375 = vmatprep.subr.bf16.mxu1 %v2863_v12  ;;  %v35_v21 = vld [vmem:[%s3473_s1] sm:$0x1] }
   0x7   :  { %17 = vsyncpa [#allocation5], 0  ;;  %v165_v22 = vrot.slane %v35_v21, 2  ;;  %v2896_v23 = vpack.c.bf16 %v50_v18, %v48_v17  ;;  %v2900_v24 = vpack.c.bf16 %v55_v20, %v53_v19  ;;  %v52_v25 = vld [vmem:[%s3476_s4 + $0x60] sm:$0xff]  ;;  %v54_v26 = vld [vmem:[%s3476_s4 + $0x70] sm:$0xff]  ;;  %vm70_vm0 = vcmask 261120  }
   0x8   :  { %v2911_v27 = vpack.c.bf16 %v54_v26, %v52_v25  ;;  %v34_v28 = vld [vmem:[%s3472_s0] sm:$0x1]  ;;  %vm72_vm1 = vcmask 523264   ;;  %v62_v31 = vlaneseq  ;;  %s2763_s15 = smov 64   ;;  %v190_v54 = vrot.slane %v2828_v0, 2  ;;  %v58_v20 = vld [vmem:[%s3478_s6 + $0x8] sm:$0xff] }
   0x9   :  { %2361 = vmatpush1.bf16.msra.mxu0 %v2873_v15  ;;  %2377 = vmatpush1.bf16.msra.mxu1 %v2873_v15  ;;  %v2933_v34 = vld [vmem:[%s3475_s3] sm:$0x1]  ;;  %v37_v55 = vld [vmem:[%s3473_s1 + $0x1] sm:$0x1]  ;;  %v59_v21 = vld [vmem:[%s3478_s6 + $0x10] sm:$0xff]  ;;  %vm2765_vm2 = vmmov 0  }
   0xa   :  { %2363 = vmatprep.subr.bf16.mxu0 %v2877_v16  ;;  %166 = vrot.lane.b32.xlu1 %v165_v22, %s2761_s19  ;;  %v2925_v32 = vshrl.u32 %v62_v31, 7  ;;  %v2938_v36 = vld [vmem:[%s3474_s2] sm:$0x7f]  ;;  %v2764_v22 = vmov 0.0|0.0   ;;  %v60_v26 = vld [vmem:[%s3478_s6 + $0x18] sm:$0xff]  ;;  %vm374_vm3 = vcmask 49152  }
   0xb   :  { %2379 = vmatprep.subr.bf16.mxu1 %v2877_v16  ;;  %v2969_v62 = vld [vmem:[%s3477_s5] sm:$0x1]  ;;  %vm403_vm7 = vcmask 1046528   ;;  %s2767_s13 = smov [#allocation4]  }
   0xc   :  { %v2928_v33 = vsub.s32 0, %v2925_v32  ;;  %v57_v19 = vld [vmem:[%s3478_s6] sm:$0xff] }
   0xd   :  { %2365 = vmatpush1.bf16.msra.mxu0 %v2896_v23  ;;  %2381 = vmatpush1.bf16.msra.mxu1 %v2896_v23  ;;  %v2989_v25 = vpack.c.bf16 %v58_v20, %v57_v19 }
   0xe   :  { %2367 = vmatprep.subr.bf16.mxu0 %v2900_v24  ;;  %2383 = vmatprep.subr.bf16.mxu1 %v2900_v24  ;;  %v154_v39 = vrot.slane %v2933_v34, %v2928_v33 }
  0x11   :  { %2369 = vmatpush1.bf16.msra.mxu0 %v2911_v27  ;;  %2385 = vmatpush1.bf16.msra.mxu1 %v2911_v27 }
  0x12   :  { %2393 = vmatprep.subr.bf16.mxu1 %v2838_v3  ;;  %2386 = vmatprep.subr.bf16.mxu0 %v2764_v22 }
  0x74   :  { %v68_v29 = vpop.permute.xlu0 %67 }
  0x75   :  { %v71_v30 = vsel %vm70_vm0, %v34_v28, %v68_v29  ;;  %v2998_v28 = vpack.c.bf16 %v60_v26, %v59_v21 }
  0x76   :  { %2186 = vmatmul.mubr.msk.f32.vlgmr.msra.gmra.mrb[0].mxu0 %vm72_vm1, %v71_v30 }
  0x77   :  { %2274 = vmatprep.mubr.msk.f32.mxu0 %vm2765_vm2, %v2762_v11  ;;  %2388 = vmatpush3.bf16.msra.mxu0 %v2989_v25 }
  0x78   :  { %2389 = vmatprep.subr.bf16.mxu0 %v2764_v22 }
  0x7b   :  { %2391 = vmatpush3.bf16.msra.mxu0 %v2998_v28 }
  0x7c   :  { %v167_v49 = vpop.permute.xlu1 %166  ;;  %2408 = vmatprep.subr.bf16.mxu0 %v2764_v22 }
 0x149   :  { %v142_v35 = vpop.f32.mrb[0].mxu0 }
 0x14a   :  { %v143_v37 = vpop.f32.mrb[1].mxu0 }
 0x14b   :  { %v147_v38 = vrot.slane %v143_v37, 2 }
 0x14d   :  { %v149_v40 = vadd.f32 %v147_v38, %v2938_v36  ;;  %v3018_v38 = vld [vmem:[%s3479_s7] sm:$0x1] }
 0x14f   :  { %v156_v41 = vadd.f32 %v154_v39, %v149_v40 }
 0x151   :  { %2555 = vtanh.f32 %v156_v41  ;;  %v2187_v43 = vmul.f32 -1.442695, %v156_v41 }
 0x153   :  { %2557 = vpow2.f32 %v2187_v43  ;;  %v3026_v43 = vand.u32 127, %v62_v31 }
 0x15b   :  { %v2556_v42 = vpop.eup %2555 }
 0x15c   :  { %171 = vrot.lane.b32.xlu0 %v2556_v42, %s2763_s15 }
 0x15d   :  { %v2558_v44 = vpop.eup %2557 }
 0x15e   :  { %v160_v45 = vadd.f32 1.0, %v2558_v44 }
 0x160   :  { %2559 = vrcp.f32 %v160_v45 }
 0x16a   :  { %v2560_v46 = vpop.eup %2559 }
 0x16b   :  { %v169_v50 = vmul.f32 %v2560_v46, %v167_v49 }
 0x1ce   :  { %v172_v47 = vpop.permute.xlu0 %171 }
 0x1cf   :  { %v174_v48 = vmul.f32 %v2560_v46, %v172_v47 }
 0x1d1   :  { %176 = vrot.lane.b32.xlu1 %v174_v48, %s2761_s19 }
 0x243   :  { %v177_v51 = vpop.permute.xlu1 %176 }
 0x244   :  { %v2945_v52 = vadd.f32 %v177_v51, %v169_v50 }
 0x246   :  { %2561 = vtanh.f32 %v2945_v52  ;;  %v421_v26 = vrot.slane %v2945_v52, 6 }
 0x250   :  { %v2562_v53 = vpop.eup %2561 }
 0x251   :  { %182 = vrot.lane.b32.xlu0 %v2562_v53, %s2763_s15 }
 0x255   :  { %191 = vrot.lane.b32.xlu0 %v190_v54, %s2761_s19 }
 0x259   :  { %279 = vrot.lane.b32.xlu0 %v37_v55, %s2761_s19 }
 0x2c3   :  { %v183_v56 = vpop.permute.xlu0 %182 }
 0x2c4   :  { %v185_v57 = vmul.f32 %v2560_v46, %v183_v56 }
 0x2c6   :  { %187 = vrot.lane.b32.xlu1 %v185_v57, %s2761_s19 }
 0x2c7   :  { %v192_v58 = vpop.permute.xlu0 %191 }
 0x2cb   :  { %v280_v13 = vpop.permute.xlu0 %279 }
 0x338   :  { %v188_v59 = vpop.permute.xlu1 %187 }
 0x339   :  { %v194_v60 = vsel %vm70_vm0, %v188_v59, %v192_v58 }
 0x33a   :  { %v196_v61 = vrot.slane %v194_v60, 6 }
 0x33c   :  { %2188 = vmatmul.mubr.msk.f32.vlgmr.msra.gmra.mrb[0].mxu1 %vm72_vm1, %v196_v61 }
 0x33d   :  { %2395 = vmatpush1.bf16.msra.mxu1 %v2849_v7  ;;  %515 = vmatprep.mubr.f32.mxu1 %v2762_v11 }
 0x33e   :  { %2397 = vmatprep.subr.bf16.mxu1 %v2863_v12 }
 0x341   :  { %2399 = vmatpush1.bf16.msra.mxu1 %v2873_v15 }
 0x342   :  { %2401 = vmatprep.subr.bf16.mxu1 %v2877_v16 }
 0x345   :  { %2403 = vmatpush1.bf16.msra.mxu1 %v2896_v23 }
 0x346   :  { %2405 = vmatprep.subr.bf16.mxu1 %v2900_v24 }
 0x349   :  { %2407 = vmatpush1.bf16.msra.mxu1 %v2911_v27 }
 0x34a   :  { %2430 = vmatprep.subr.bf16.mxu1 %v2764_v22 }
 0x40f   :  { %v265_v63 = vpop.f32.mrb[0].mxu1 }
 0x410   :  { %v270_v0 = vadd.f32 %v265_v63, %v2969_v62  ;;  %v2972_v1 = vpop.f32.mrb[1].mxu1 }
 0x412   :  { %2563 = vtanh.f32 %v270_v0  ;;  %v2189_v4 = vmul.f32 -1.442695, %v270_v0 }
 0x414   :  { %2565 = vpow2.f32 %v2189_v4 }
 0x41c   :  { %v2564_v2 = vpop.eup %2563 }
 0x41d   :  { %284 = vrot.lane.b32.xlu1 %v2564_v2, %s2763_s15 }
 0x41e   :  { %v2566_v5 = vpop.eup %2565 }
 0x41f   :  { %v274_v6 = vadd.f32 1.0, %v2566_v5 }
 0x421   :  { %2567 = vrcp.f32 %v274_v6 }
 0x42b   :  { %v2568_v8 = vpop.eup %2567 }
 0x42c   :  { %v282_v14 = vmul.f32 %v2568_v8, %v280_v13 }
 0x48f   :  { %v285_v9 = vpop.permute.xlu1 %284 }
 0x490   :  { %v287_v10 = vmul.f32 %v2568_v8, %v285_v9 }
 0x492   :  { %289 = vrot.lane.b32.xlu1 %v287_v10, %s2761_s19 }
 0x504   :  { %v290_v17 = vpop.permute.xlu1 %289 }
 0x505   :  { %v2976_v18 = vadd.f32 %v290_v17, %v282_v14 }
 0x507   :  { %2569 = vtanh.f32 %v2976_v18 }
 0x511   :  { %v2570_v29 = vpop.eup %2569 }
 0x512   :  { %295 = vrot.lane.b32.xlu0 %v2570_v29, %s2763_s15 }
 0x584   :  { %v296_v30 = vpop.permute.xlu0 %295 }
 0x585   :  { %v3004_v35 = vmul.f32 %v2568_v8, %v296_v30 }
 0x587   :  { %300 = vrot.lane.b32.xlu1 %v3004_v35, %s2761_s19 }
 0x5f9   :  { %v301_v37 = vpop.permute.xlu1 %300 }
 0x5fa   :  { %2275 = vmatmul.mubr.msk.f32.vlgmr.msra.gmra.mrb[2].mxu0 %vm70_vm0, %v301_v37 }
 0x5fb   :  { %2410 = vmatpush3.bf16.msra.mxu0 %v2989_v25  ;;  %2285 = vmatprep.mubr.msk.f32.mxu0 %vm2765_vm2, %v2762_v11 }
 0x5fc   :  { %2411 = vmatprep.subr.bf16.mxu0 %v2764_v22 }
 0x5ff   :  { %2413 = vmatpush3.bf16.msra.mxu0 %v2998_v28 }
 0x600   :  { %2415 = vmatprep.subr.bf16.mxu0 %v2838_v3 }
 0x6cd   :  { %v370_v39 = vpop.f32.mrb[2].mxu0 }
 0x6ce   :  { %v3021_v40 = vadd.f32 %v370_v39, %v3018_v38  ;;  %v2276_v41 = vpop.f32.mrb[3].mxu0 }
 0x6d0   :  { %v375_v42 = vsel %vm374_vm3, %v3021_v40, -inf }
 0x6d1   :  { %376 = vmax.xlane.f32.xlu0 %v375_v42 }
 0x75e   :  { %v377_v44 = vpop.xlane.xlu0 %376 }
 0x75f   :  { %vm378_vm4 = vcmp.eq.f32.partialorder %v3021_v40, %v377_v44 }
 0x760   :  { %v379_v45 = vsel %vm378_vm4, %v3026_v43, 7 }
 0x761   :  { %v380_v46 = vsel %vm374_vm3, %v379_v45, 2147483647 }
 0x762   :  { %v382_v47 = vshra.s32 %v380_v46, 16  ;;  %v381_v49 = vand.u32 65535, %v380_v46 }
 0x764   :  { %v384_v48 = vcvt.s32.f32 %v382_v47  ;;  %v383_v51 = vcvt.s32.f32 %v381_v49 }
 0x766   :  { %385 = vmin.xlane.f32.xlu1 %v384_v48 }
 0x7f3   :  { %v386_v50 = vpop.xlane.xlu1 %385 }
 0x7f4   :  { %vm387_vm5 = vcmp.eq.f32.partialorder %v384_v48, %v386_v50  ;;  %v392_v54 = vcvt.f32.s32 %v386_v50 }
 0x7f5   :  { %v388_v53 = vsel %vm387_vm5, %v383_v51, inf }
 0x7f6   :  { %389 = vmin.xlane.f32.xlu0 %v388_v53  ;;  %v393_v31 = vshll.u32 %v392_v54, 16 }
 0x883   :  { %v390_v55 = vpop.xlane.xlu0 %389 }
 0x884   :  { %v391_v56 = vcvt.f32.s32 %v390_v55 }
 0x886   :  { %v394_v57 = vadd.s32 %v393_v31, %v391_v56 }
 0x888   :  { %v398_v58 = vrot.slane %v394_v57, %v2928_v33 }
 0x88a   :  { %vm399_vm6 = vcmp.eq.s32.totalorder %v2925_v32, %v398_v58 }
 0x88b   :  { %v2191_v59 = vsel %vm399_vm6, 1.0, %v2762_v11 }
 0x88c   :  { %v402_v60 = vmul.f32 %v2191_v59, %v2938_v36 }
 0x88e   :  { %v404_v61 = vsel %vm403_vm7, %v402_v60, 0.0 }
 0x88f   :  { %v405_v63 = vrot.slane %v404_v61, 4 }
 0x891   :  { %v406_v0 = vadd.f32 %v405_v63, %v404_v61 }
 0x893   :  { %v407_v2 = vrot.slane %v406_v0, 2 }
 0x895   :  { %v408_v4 = vadd.f32 %v407_v2, %v406_v0 }
 0x897   :  { %v409_v5 = vrot.slane %v408_v4, 1 }
 0x899   :  { %v410_v6 = vadd.f32 %v409_v5, %v408_v4 }
 0x89b   :  { %v411_v8 = vadd.f32 %v410_v6, %v2972_v1 }
 0x89d   :  { %v412_v9 = vadd.f32 %v411_v8, %v2933_v34 }
 0x89f   :  { %2571 = vtanh.f32 %v412_v9  ;;  %v2192_v13 = vmul.f32 -1.442695, %v412_v9 }
 0x8a1   :  { %2573 = vpow2.f32 %v2192_v13 }
 0x8a9   :  { %v2572_v10 = vpop.eup %2571 }
 0x8aa   :  { %425 = vrot.lane.b32.xlu0 %v2572_v10, %s2763_s15 }
 0x8ab   :  { %v2574_v14 = vpop.eup %2573 }
 0x8ac   :  { %v416_v17 = vadd.f32 1.0, %v2574_v14 }
 0x8ae   :  { %2575 = vrcp.f32 %v416_v17 }
 0x8b8   :  { %v2576_v19 = vpop.eup %2575 }
 0x8b9   :  { %v423_v29 = vmul.f32 %v2576_v19, %v421_v26 }
 0x91c   :  { %v426_v20 = vpop.permute.xlu0 %425 }
 0x91d   :  { %v428_v21 = vmul.f32 %v2576_v19, %v426_v20 }
 0x91f   :  { %430 = vrot.lane.b32.xlu1 %v428_v21, %s2761_s19 }
 0x991   :  { %v431_v1 = vpop.permute.xlu1 %430 }
 0x992   :  { %v3041_v30 = vadd.f32 %v431_v1, %v423_v29 }
 0x994   :  { %2577 = vtanh.f32 %v3041_v30 }
 0x99e   :  { %v2578_v37 = vpop.eup %2577 }
 0x99f   :  { %436 = vrot.lane.b32.xlu1 %v2578_v37, %s2763_s15 }
 0x9a3   :  { %444 = vrot.lane.b32.xlu1 %v3004_v35, %s2763_s15 }
 0xa11   :  { %v437_v39 = vpop.permute.xlu1 %436 }
 0xa12   :  { %v439_v41 = vmul.f32 %v2576_v19, %v437_v39 }
 0xa14   :  { %441 = vrot.lane.b32.xlu0 %v439_v41, %s2761_s19 }
 0xa15   :  { %v445_v42 = vpop.permute.xlu1 %444 }
 0xa86   :  { %v442_v44 = vpop.permute.xlu0 %441 }
 0xa87   :  { %v447_v52 = vsel %vm70_vm0, %v442_v44, %v445_v42 }
 0xa88   :  { %2193 = vmatmul.mubr.msk.f32.vlgmr.msra.gmra.mrb[2].mxu1 %vm72_vm1, %v447_v52 }
 0xa89   :  { %2432 = vmatpush3.bf16.msra.mxu1 %v2989_v25  ;;  %2296 = vmatprep.mubr.msk.f32.mxu1 %vm2765_vm2, %v2762_v11 }
 0xa8a   :  { %2433 = vmatprep.subr.bf16.mxu1 %v2764_v22 }
 0xa8d   :  { %2435 = vmatpush3.bf16.msra.mxu1 %v2998_v28 }
 0xa8e   :  { %2437 = vmatprep.subr.bf16.mxu1 %v2838_v3 }
 0xb5b   :  { %v517_v35 = vpop.f32.mrb[2].mxu1 }
 0xb5c   :  { %v522_v45 = vadd.f32 %v517_v35, %v2969_v62  ;;  %v3057_v46 = vpop.f32.mrb[3].mxu1 }
 0xb5e   :  { %2579 = vtanh.f32 %v522_v45  ;;  %v2194_v48 = vmul.f32 -1.442695, %v522_v45 }
 0xb60   :  { %2581 = vpow2.f32 %v2194_v48 }
 0xb68   :  { %v2580_v47 = vpop.eup %2579 }
 0xb69   :  { %532 = vrot.lane.b32.xlu0 %v2580_v47, %s2763_s15 }
 0xb6a   :  { %v2582_v49 = vpop.eup %2581 }
 0xb6b   :  { %v526_v50 = vadd.f32 1.0, %v2582_v49 }
 0xb6d   :  { %2583 = vrcp.f32 %v526_v50 }
 0xb77   :  { %v2584_v51 = vpop.eup %2583 }
 0xb78   :  { %v530_v55 = vmul.f32 %v2584_v51, %v2976_v18 }
 0xbdb   :  { %v533_v53 = vpop.permute.xlu0 %532 }
 0xbdc   :  { %v535_v54 = vmul.f32 %v2584_v51, %v533_v53 }
 0xbde   :  { %537 = vrot.lane.b32.xlu1 %v535_v54, %s2761_s19 }
 0xc50   :  { %v538_v31 = vpop.permute.xlu1 %537 }
 0xc51   :  { %v3062_v56 = vadd.f32 %v538_v31, %v530_v55 }
 0xc53   :  { %2585 = vtanh.f32 %v3062_v56 }
 0xc5d   :  { %v2586_v57 = vpop.eup %2585 }
 0xc5e   :  { %543 = vrot.lane.b32.xlu0 %v2586_v57, %s2763_s15 }
 0xcd0   :  { %v544_v58 = vpop.permute.xlu0 %543 }
 0xcd1   :  { %v3066_v59 = vmul.f32 %v2584_v51, %v544_v58 }
 0xcd3   :  { %548 = vrot.lane.b32.xlu1 %v3066_v59, %s2761_s19 }
 0xd45   :  { %v549_v60 = vpop.permute.xlu1 %548 }
 0xd46   :  { %2286 = vmatmul.mubr.msk.f32.vlgmr.msra.gmra.mrb[4].mxu0 %vm70_vm0, %v549_v60 }
 0xd47   :  { %2417 = vmatpush1.bf16.msra.mxu0 %v2849_v7  ;;  %758 = vmatprep.mubr.f32.mxu0 %v2762_v11 }
 0xd48   :  { %2419 = vmatprep.subr.bf16.mxu0 %v2863_v12 }
 0xd4b   :  { %2421 = vmatpush1.bf16.msra.mxu0 %v2873_v15 }
 0xd4c   :  { %2423 = vmatprep.subr.bf16.mxu0 %v2877_v16 }
 0xd4f   :  { %2425 = vmatpush1.bf16.msra.mxu0 %v2896_v23 }
 0xd50   :  { %2427 = vmatprep.subr.bf16.mxu0 %v2900_v24 }
 0xd53   :  { %2429 = vmatpush1.bf16.msra.mxu0 %v2911_v27 }
 0xd54   :  { %2452 = vmatprep.subr.bf16.mxu0 %v2764_v22 }
 0xe19   :  { %v618_v18 = vpop.f32.mrb[4].mxu0 }
 0xe1a   :  { %v3081_v61 = vadd.f32 %v618_v18, %v3018_v38  ;;  %v2287_v63 = vpop.f32.mrb[5].mxu0 }
 0xe1c   :  { %v622_v0 = vsel %vm374_vm3, %v3081_v61, -inf }
 0xe1d   :  { %623 = vmax.xlane.f32.xlu0 %v622_v0 }
 0xeaa   :  { %v624_v2 = vpop.xlane.xlu0 %623 }
 0xeab   :  { %vm625_vm8 = vcmp.eq.f32.partialorder %v3081_v61, %v624_v2 }
 0xeac   :  { %v626_v4 = vsel %vm625_vm8, %v3026_v43, 7 }
 0xead   :  { %v627_v5 = vsel %vm374_vm3, %v626_v4, 2147483647 }
 0xeae   :  { %v629_v6 = vshra.s32 %v627_v5, 16  ;;  %v628_v9 = vand.u32 65535, %v627_v5 }
 0xeb0   :  { %v631_v8 = vcvt.s32.f32 %v629_v6  ;;  %v630_v13 = vcvt.s32.f32 %v628_v9 }
 0xeb2   :  { %632 = vmin.xlane.f32.xlu1 %v631_v8 }
 0xf3f   :  { %v633_v10 = vpop.xlane.xlu1 %632 }
 0xf40   :  { %vm634_vm9 = vcmp.eq.f32.partialorder %v631_v8, %v633_v10  ;;  %v639_v17 = vcvt.f32.s32 %v633_v10 }
 0xf41   :  { %v635_v14 = vsel %vm634_vm9, %v630_v13, inf }
 0xf42   :  { %636 = vmin.xlane.f32.xlu0 %v635_v14  ;;  %v640_v20 = vshll.u32 %v639_v17, 16 }
 0xfcf   :  { %v637_v19 = vpop.xlane.xlu0 %636 }
 0xfd0   :  { %v638_v21 = vcvt.f32.s32 %v637_v19 }
 0xfd2   :  { %v641_v26 = vadd.s32 %v640_v20, %v638_v21 }
 0xfd4   :  { %v645_v29 = vrot.slane %v641_v26, %v2928_v33 }
 0xfd6   :  { %vm646_vm10 = vcmp.eq.s32.totalorder %v2925_v32, %v645_v29 }
 0xfd7   :  { %v2196_v1 = vsel %vm646_vm10, 1.0, %v2762_v11 }
 0xfd8   :  { %v649_v37 = vmul.f32 %v2196_v1, %v2938_v36 }
 0xfda   :  { %v650_v39 = vsel %vm403_vm7, %v649_v37, 0.0 }
 0xfdb   :  { %v651_v41 = vrot.slane %v650_v39, 4 }
 0xfdd   :  { %v652_v42 = vadd.f32 %v651_v41, %v650_v39 }
 0xfdf   :  { %v653_v44 = vrot.slane %v652_v42, 2 }
 0xfe1   :  { %v654_v52 = vadd.f32 %v653_v44, %v652_v42 }
 0xfe3   :  { %v655_v35 = vrot.slane %v654_v52, 1 }
 0xfe5   :  { %v656_v45 = vadd.f32 %v655_v35, %v654_v52 }
 0xfe7   :  { %v657_v47 = vadd.f32 %v656_v45, %v3057_v46 }
 0xfe9   :  { %v658_v48 = vadd.f32 %v657_v47, %v2933_v34 }
 0xfeb   :  { %2587 = vtanh.f32 %v658_v48  ;;  %v2197_v50 = vmul.f32 -1.442695, %v658_v48 }
 0xfed   :  { %2589 = vpow2.f32 %v2197_v50 }
 0xff5   :  { %v2588_v49 = vpop.eup %2587 }
 0xff6   :  { %668 = vrot.lane.b32.xlu0 %v2588_v49, %s2763_s15 }
 0xff7   :  { %v2590_v51 = vpop.eup %2589 }
 0xff8   :  { %v662_v53 = vadd.f32 1.0, %v2590_v51 }
 0xffa   :  { %2591 = vrcp.f32 %v662_v53 }
0x1004   :  { %v2592_v54 = vpop.eup %2591 }
0x1005   :  { %v666_v57 = vmul.f32 %v2592_v54, %v3041_v30 }
0x1068   :  { %v669_v55 = vpop.permute.xlu0 %668 }
0x1069   :  { %v671_v31 = vmul.f32 %v2592_v54, %v669_v55 }
0x106b   :  { %673 = vrot.lane.b32.xlu1 %v671_v31, %s2761_s19 }
0x10dd   :  { %v674_v58 = vpop.permute.xlu1 %673 }
0x10de   :  { %v3098_v46 = vadd.f32 %v674_v58, %v666_v57 }
0x10e0   :  { %2593 = vtanh.f32 %v3098_v46 }
0x10ea   :  { %v2594_v60 = vpop.eup %2593 }
0x10eb   :  { %679 = vrot.lane.b32.xlu1 %v2594_v60, %s2763_s15 }
0x10ef   :  { %687 = vrot.lane.b32.xlu1 %v3066_v59, %s2763_s15 }
0x115d   :  { %v680_v18 = vpop.permute.xlu1 %679 }
0x115e   :  { %v682_v63 = vmul.f32 %v2592_v54, %v680_v18 }
0x1160   :  { %684 = vrot.lane.b32.xlu0 %v682_v63, %s2761_s19 }
0x1161   :  { %v688_v0 = vpop.permute.xlu1 %687 }
0x11d2   :  { %v685_v2 = vpop.permute.xlu0 %684 }
0x11d3   :  { %v690_v4 = vsel %vm70_vm0, %v685_v2, %v688_v0 }
0x11d4   :  { %2198 = vmatmul.mubr.msk.f32.vlgmr.msra.gmra.mrb[6].mxu0 %vm72_vm1, %v690_v4 }
0x11d5   :  { %2454 = vmatpush3.bf16.msra.mxu0 %v2989_v25  ;;  %2307 = vmatprep.mubr.msk.f32.mxu0 %vm2765_vm2, %v2762_v11 }
0x11d6   :  { %2455 = vmatprep.subr.bf16.mxu0 %v2764_v22 }
0x11d9   :  { %2457 = vmatpush3.bf16.msra.mxu0 %v2998_v28 }
0x11da   :  { %2459 = vmatprep.subr.bf16.mxu0 %v2838_v3 }
0x12a7   :  { %v760_v30 = vpop.f32.mrb[6].mxu0 }
0x12a8   :  { %v765_v59 = vadd.f32 %v760_v30, %v2969_v62  ;;  %v3114_v5 = vpop.f32.mrb[7].mxu0 }
0x12aa   :  { %2595 = vtanh.f32 %v765_v59  ;;  %v2199_v8 = vmul.f32 -1.442695, %v765_v59 }
0x12ac   :  { %2597 = vpow2.f32 %v2199_v8 }
0x12b4   :  { %v2596_v6 = vpop.eup %2595 }
0x12b5   :  { %775 = vrot.lane.b32.xlu0 %v2596_v6, %s2763_s15 }
0x12b6   :  { %v2598_v9 = vpop.eup %2597 }
0x12b7   :  { %v769_v10 = vadd.f32 1.0, %v2598_v9 }
0x12b9   :  { %2599 = vrcp.f32 %v769_v10 }
0x12c3   :  { %v2600_v13 = vpop.eup %2599 }
0x12c4   :  { %v773_v19 = vmul.f32 %v2600_v13, %v3062_v56 }
0x1327   :  { %v776_v14 = vpop.permute.xlu0 %775 }
0x1328   :  { %v778_v17 = vmul.f32 %v2600_v13, %v776_v14 }
0x132a   :  { %780 = vrot.lane.b32.xlu1 %v778_v17, %s2761_s19 }
0x139c   :  { %v781_v20 = vpop.permute.xlu1 %780 }
0x139d   :  { %v3119_v21 = vadd.f32 %v781_v20, %v773_v19 }
0x139f   :  { %2601 = vtanh.f32 %v3119_v21 }
0x13a9   :  { %v2602_v26 = vpop.eup %2601 }
0x13aa   :  { %786 = vrot.lane.b32.xlu0 %v2602_v26, %s2763_s15 }
0x141c   :  { %v787_v29 = vpop.permute.xlu0 %786 }
0x141d   :  { %v3123_v1 = vmul.f32 %v2600_v13, %v787_v29 }
0x141f   :  { %791 = vrot.lane.b32.xlu1 %v3123_v1, %s2761_s19 }
0x1491   :  { %v792_v37 = vpop.permute.xlu1 %791 }
0x1492   :  { %2297 = vmatmul.mubr.msk.f32.vlgmr.msra.gmra.mrb[4].mxu1 %vm70_vm0, %v792_v37 }
0x1493   :  { %2439 = vmatpush1.bf16.msra.mxu1 %v2849_v7  ;;  %1001 = vmatprep.mubr.f32.mxu1 %v2762_v11 }
0x1494   :  { %2441 = vmatprep.subr.bf16.mxu1 %v2863_v12 }
0x1497   :  { %2443 = vmatpush1.bf16.msra.mxu1 %v2873_v15 }
0x1498   :  { %2445 = vmatprep.subr.bf16.mxu1 %v2877_v16 }
0x149b   :  { %2447 = vmatpush1.bf16.msra.mxu1 %v2896_v23 }
0x149c   :  { %2449 = vmatprep.subr.bf16.mxu1 %v2900_v24 }
0x149f   :  { %2451 = vmatpush1.bf16.msra.mxu1 %v2911_v27 }
0x14a0   :  { %2474 = vmatprep.subr.bf16.mxu1 %v2764_v22 }
0x1565   :  { %v861_v56 = vpop.f32.mrb[4].mxu1 }
0x1566   :  { %v3138_v39 = vadd.f32 %v861_v56, %v3018_v38  ;;  %v2298_v41 = vpop.f32.mrb[5].mxu1 }
0x1568   :  { %v865_v42 = vsel %vm374_vm3, %v3138_v39, -inf }
0x1569   :  { %866 = vmax.xlane.f32.xlu0 %v865_v42 }
0x15f6   :  { %v867_v44 = vpop.xlane.xlu0 %866 }
0x15f7   :  { %vm868_vm11 = vcmp.eq.f32.partialorder %v3138_v39, %v867_v44 }
0x15f8   :  { %v869_v52 = vsel %vm868_vm11, %v3026_v43, 7 }
0x15f9   :  { %v870_v35 = vsel %vm374_vm3, %v869_v52, 2147483647 }
0x15fa   :  { %v872_v45 = vshra.s32 %v870_v35, 16  ;;  %v871_v48 = vand.u32 65535, %v870_v35 }
0x15fc   :  { %v874_v47 = vcvt.s32.f32 %v872_v45  ;;  %v873_v50 = vcvt.s32.f32 %v871_v48 }
0x15fe   :  { %875 = vmin.xlane.f32.xlu1 %v874_v47 }
0x168b   :  { %v876_v49 = vpop.xlane.xlu1 %875 }
0x168c   :  { %vm877_vm12 = vcmp.eq.f32.partialorder %v874_v47, %v876_v49  ;;  %v882_v53 = vcvt.f32.s32 %v876_v49 }
0x168d   :  { %v878_v51 = vsel %vm877_vm12, %v873_v50, inf }
0x168e   :  { %879 = vmin.xlane.f32.xlu0 %v878_v51  ;;  %v883_v55 = vshll.u32 %v882_v53, 16 }
0x171b   :  { %v880_v54 = vpop.xlane.xlu0 %879 }
0x171c   :  { %v881_v31 = vcvt.f32.s32 %v880_v54 }
0x171e   :  { %v884_v57 = vadd.s32 %v883_v55, %v881_v31 }
0x1720   :  { %v888_v58 = vrot.slane %v884_v57, %v2928_v33 }
0x1722   :  { %vm889_vm13 = vcmp.eq.s32.totalorder %v2925_v32, %v888_v58 }
0x1723   :  { %v2201_v60 = vsel %vm889_vm13, 1.0, %v2762_v11 }
0x1724   :  { %v892_v18 = vmul.f32 %v2201_v60, %v2938_v36 }
0x1726   :  { %v893_v63 = vsel %vm403_vm7, %v892_v18, 0.0 }
0x1727   :  { %v894_v0 = vrot.slane %v893_v63, 4 }
0x1729   :  { %v895_v2 = vadd.f32 %v894_v0, %v893_v63 }
0x172b   :  { %v896_v4 = vrot.slane %v895_v2, 2 }
0x172d   :  { %v897_v30 = vadd.f32 %v896_v4, %v895_v2 }
0x172f   :  { %v898_v59 = vrot.slane %v897_v30, 1 }
0x1731   :  { %v899_v6 = vadd.f32 %v898_v59, %v897_v30 }
0x1733   :  { %v900_v8 = vadd.f32 %v899_v6, %v3114_v5 }
0x1735   :  { %v901_v9 = vadd.f32 %v900_v8, %v2933_v34 }
0x1737   :  { %2603 = vtanh.f32 %v901_v9  ;;  %v2202_v13 = vmul.f32 -1.442695, %v901_v9 }
0x1739   :  { %2605 = vpow2.f32 %v2202_v13 }
0x1741   :  { %v2604_v10 = vpop.eup %2603 }
0x1742   :  { %911 = vrot.lane.b32.xlu0 %v2604_v10, %s2763_s15 }
0x1743   :  { %v2606_v14 = vpop.eup %2605 }
0x1744   :  { %v905_v17 = vadd.f32 1.0, %v2606_v14 }
0x1746   :  { %2607 = vrcp.f32 %v905_v17 }
0x1750   :  { %v2608_v19 = vpop.eup %2607 }
0x1751   :  { %v909_v29 = vmul.f32 %v2608_v19, %v3098_v46 }
0x17b4   :  { %v912_v20 = vpop.permute.xlu0 %911 }
0x17b5   :  { %v914_v26 = vmul.f32 %v2608_v19, %v912_v20 }
0x17b7   :  { %916 = vrot.lane.b32.xlu1 %v914_v26, %s2761_s19 }
0x1829   :  { %v917_v37 = vpop.permute.xlu1 %916 }
0x182a   :  { %v3155_v5 = vadd.f32 %v917_v37, %v909_v29 }
0x182c   :  { %2609 = vtanh.f32 %v3155_v5 }
0x1836   :  { %v2610_v56 = vpop.eup %2609 }
0x1837   :  { %922 = vrot.lane.b32.xlu1 %v2610_v56, %s2763_s15 }
0x183b   :  { %930 = vrot.lane.b32.xlu1 %v3123_v1, %s2763_s15 }
0x18a9   :  { %v923_v41 = vpop.permute.xlu1 %922 }
0x18aa   :  { %v925_v42 = vmul.f32 %v2608_v19, %v923_v41 }
0x18ac   :  { %927 = vrot.lane.b32.xlu0 %v925_v42, %s2761_s19 }
0x18ad   :  { %v931_v44 = vpop.permute.xlu1 %930 }
0x191e   :  { %v928_v52 = vpop.permute.xlu0 %927 }
0x191f   :  { %v933_v35 = vsel %vm70_vm0, %v928_v52, %v931_v44 }
0x1920   :  { %2203 = vmatmul.mubr.msk.f32.vlgmr.msra.gmra.mrb[6].mxu1 %vm72_vm1, %v933_v35 }
0x1921   :  { %2476 = vmatpush3.bf16.msra.mxu1 %v2989_v25  ;;  %2318 = vmatprep.mubr.msk.f32.mxu1 %vm2765_vm2, %v2762_v11 }
0x1922   :  { %2477 = vmatprep.subr.bf16.mxu1 %v2764_v22 }
0x1925   :  { %2479 = vmatpush3.bf16.msra.mxu1 %v2998_v28 }
0x1926   :  { %2481 = vmatprep.subr.bf16.mxu1 %v2838_v3 }
0x19f3   :  { %v1003_v46 = vpop.f32.mrb[6].mxu1 }
0x19f4   :  { %v1008_v1 = vadd.f32 %v1003_v46, %v2969_v62  ;;  %v3171_v45 = vpop.f32.mrb[7].mxu1 }
0x19f6   :  { %2611 = vtanh.f32 %v1008_v1  ;;  %v2204_v48 = vmul.f32 -1.442695, %v1008_v1 }
0x19f8   :  { %2613 = vpow2.f32 %v2204_v48 }
0x1a00   :  { %v2612_v47 = vpop.eup %2611 }
0x1a01   :  { %1018 = vrot.lane.b32.xlu0 %v2612_v47, %s2763_s15 }
0x1a02   :  { %v2614_v49 = vpop.eup %2613 }
0x1a03   :  { %v1012_v50 = vadd.f32 1.0, %v2614_v49 }
0x1a05   :  { %2615 = vrcp.f32 %v1012_v50 }
0x1a0f   :  { %v2616_v51 = vpop.eup %2615 }
0x1a10   :  { %v1016_v55 = vmul.f32 %v2616_v51, %v3119_v21 }
0x1a73   :  { %v1019_v53 = vpop.permute.xlu0 %1018 }
0x1a74   :  { %v1021_v54 = vmul.f32 %v2616_v51, %v1019_v53 }
0x1a76   :  { %1023 = vrot.lane.b32.xlu1 %v1021_v54, %s2761_s19 }
0x1ae8   :  { %v1024_v31 = vpop.permute.xlu1 %1023 }
0x1ae9   :  { %v3176_v57 = vadd.f32 %v1024_v31, %v1016_v55 }
0x1aeb   :  { %2617 = vtanh.f32 %v3176_v57 }
0x1af5   :  { %v2618_v58 = vpop.eup %2617 }
0x1af6   :  { %1029 = vrot.lane.b32.xlu0 %v2618_v58, %s2763_s15 }
0x1b68   :  { %v1030_v60 = vpop.permute.xlu0 %1029 }
0x1b69   :  { %v3180_v18 = vmul.f32 %v2616_v51, %v1030_v60 }
0x1b6b   :  { %1034 = vrot.lane.b32.xlu1 %v3180_v18, %s2761_s19 }
0x1bdd   :  { %v1035_v63 = vpop.permute.xlu1 %1034 }
0x1bde   :  { %2308 = vmatmul.mubr.msk.f32.vlgmr.msra.gmra.mrb[8].mxu0 %vm70_vm0, %v1035_v63 }
0x1bdf   :  { %2461 = vmatpush1.bf16.msra.mxu0 %v2849_v7  ;;  %1244 = vmatprep.mubr.f32.mxu0 %v2762_v11 }
0x1be0   :  { %2463 = vmatprep.subr.bf16.mxu0 %v2863_v12 }
0x1be3   :  { %2465 = vmatpush1.bf16.msra.mxu0 %v2873_v15 }
0x1be4   :  { %2467 = vmatprep.subr.bf16.mxu0 %v2877_v16 }
0x1be7   :  { %2469 = vmatpush1.bf16.msra.mxu0 %v2896_v23 }
0x1be8   :  { %2471 = vmatprep.subr.bf16.mxu0 %v2900_v24 }
0x1beb   :  { %2473 = vmatpush1.bf16.msra.mxu0 %v2911_v27 }
0x1bec   :  { %2496 = vmatprep.subr.bf16.mxu0 %v2764_v22 }
0x1cb1   :  { %v1104_v21 = vpop.f32.mrb[8].mxu0 }
0x1cb2   :  { %v3195_v0 = vadd.f32 %v1104_v21, %v3018_v38  ;;  %v2309_v2 = vpop.f32.mrb[9].mxu0 }
0x1cb4   :  { %v1108_v4 = vsel %vm374_vm3, %v3195_v0, -inf }
0x1cb5   :  { %1109 = vmax.xlane.f32.xlu0 %v1108_v4 }
0x1d42   :  { %v1110_v30 = vpop.xlane.xlu0 %1109 }
0x1d43   :  { %vm1111_vm14 = vcmp.eq.f32.partialorder %v3195_v0, %v1110_v30 }
0x1d44   :  { %v1112_v59 = vsel %vm1111_vm14, %v3026_v43, 7  ;;  %vm2104_vm14 = vcmask 1042432  }
0x1d45   :  { %v1113_v6 = vsel %vm374_vm3, %v1112_v59, 2147483647 }
0x1d46   :  { %v1115_v8 = vshra.s32 %v1113_v6, 16  ;;  %v1114_v10 = vand.u32 65535, %v1113_v6 }
0x1d48   :  { %v1117_v9 = vcvt.s32.f32 %v1115_v8  ;;  %v1116_v14 = vcvt.s32.f32 %v1114_v10 }
0x1d4a   :  { %1118 = vmin.xlane.f32.xlu1 %v1117_v9 }
0x1dd7   :  { %v1119_v13 = vpop.xlane.xlu1 %1118 }
0x1dd8   :  { %vm1120_vm15 = vcmp.eq.f32.partialorder %v1117_v9, %v1119_v13  ;;  %v1125_v19 = vcvt.f32.s32 %v1119_v13 }
0x1dd9   :  { %v1121_v17 = vsel %vm1120_vm15, %v1116_v14, inf  ;;  %vm2106_vm15 = vcmask 1043456  }
0x1dda   :  { %1122 = vmin.xlane.f32.xlu0 %v1121_v17  ;;  %v1126_v26 = vshll.u32 %v1125_v19, 16 }
0x1e67   :  { %v1123_v20 = vpop.xlane.xlu0 %1122 }
0x1e68   :  { %v1124_v29 = vcvt.f32.s32 %v1123_v20 }
0x1e6a   :  { %v1127_v37 = vadd.s32 %v1126_v26, %v1124_v29 }
0x1e6c   :  { %v1131_v56 = vrot.slane %v1127_v37, %v2928_v33 }
0x1e6e   :  { %vm1132_vm4 = vcmp.eq.s32.totalorder %v2925_v32, %v1131_v56 }
0x1e6f   :  { %v2206_v41 = vsel %vm1132_vm4, 1.0, %v2762_v11  ;;  %vm2110_vm4 = vcmask 1045504  }
0x1e70   :  { %v1135_v42 = vmul.f32 %v2206_v41, %v2938_v36 }
0x1e72   :  { %v1136_v44 = vsel %vm403_vm7, %v1135_v42, 0.0 }
0x1e73   :  { %v1137_v52 = vrot.slane %v1136_v44, 4 }
0x1e75   :  { %v1138_v35 = vadd.f32 %v1137_v52, %v1136_v44 }
0x1e77   :  { %v1139_v46 = vrot.slane %v1138_v35, 2 }
0x1e79   :  { %v1140_v1 = vadd.f32 %v1139_v46, %v1138_v35 }
0x1e7b   :  { %v1141_v47 = vrot.slane %v1140_v1, 1 }
0x1e7d   :  { %v1142_v48 = vadd.f32 %v1141_v47, %v1140_v1 }
0x1e7f   :  { %v1143_v49 = vadd.f32 %v1142_v48, %v3171_v45 }
0x1e81   :  { %v1144_v50 = vadd.f32 %v1143_v49, %v2933_v34 }
0x1e83   :  { %2619 = vtanh.f32 %v1144_v50  ;;  %v2207_v53 = vmul.f32 -1.442695, %v1144_v50 }
0x1e85   :  { %2621 = vpow2.f32 %v2207_v53 }
0x1e8d   :  { %v2620_v51 = vpop.eup %2619 }
0x1e8e   :  { %1154 = vrot.lane.b32.xlu0 %v2620_v51, %s2763_s15 }
0x1e8f   :  { %v2622_v54 = vpop.eup %2621 }
0x1e90   :  { %v1148_v36 = vadd.f32 1.0, %v2622_v54 }
0x1e92   :  { %2623 = vrcp.f32 %v1148_v36 }
0x1e9c   :  { %v2624_v55 = vpop.eup %2623 }
0x1e9d   :  { %v1152_v60 = vmul.f32 %v2624_v55, %v3155_v5 }
0x1f00   :  { %v1155_v31 = vpop.permute.xlu0 %1154 }
0x1f01   :  { %v1157_v58 = vmul.f32 %v2624_v55, %v1155_v31 }
0x1f03   :  { %1159 = vrot.lane.b32.xlu1 %v1157_v58, %s2761_s19 }
0x1f75   :  { %v1160_v63 = vpop.permute.xlu1 %1159 }
0x1f76   :  { %v3212_v45 = vadd.f32 %v1160_v63, %v1152_v60  ;;  %v3265_v63 = vld [vmem:[%s3474_s2] sm:$0x7f] }
0x1f78   :  { %2625 = vtanh.f32 %v3212_v45 }
0x1f82   :  { %v2626_v34 = vpop.eup %2625 }
0x1f83   :  { %1165 = vrot.lane.b32.xlu1 %v2626_v34, %s2763_s15 }
0x1f87   :  { %1173 = vrot.lane.b32.xlu1 %v3180_v18, %s2763_s15 }
0x1ff5   :  { %v1166_v21 = vpop.permute.xlu1 %1165 }
0x1ff6   :  { %v1168_v2 = vmul.f32 %v2624_v55, %v1166_v21 }
0x1ff8   :  { %1170 = vrot.lane.b32.xlu0 %v1168_v2, %s2761_s19 }
0x1ff9   :  { %v1174_v4 = vpop.permute.xlu1 %1173 }
0x206a   :  { %v1171_v30 = vpop.permute.xlu0 %1170 }
0x206b   :  { %v1176_v59 = vsel %vm70_vm0, %v1171_v30, %v1174_v4 }
0x206c   :  { %2208 = vmatmul.mubr.msk.f32.vlgmr.msra.gmra.mrb[10].mxu0 %vm72_vm1, %v1176_v59 }
0x206d   :  { %2498 = vmatpush3.bf16.msra.mxu0 %v2989_v25  ;;  %2329 = vmatprep.mubr.msk.f32.mxu0 %vm2765_vm2, %v2762_v11 }
0x206e   :  { %2499 = vmatprep.subr.bf16.mxu0 %v2764_v22 }
0x2071   :  { %2501 = vmatpush3.bf16.msra.mxu0 %v2998_v28 }
0x2072   :  { %2503 = vmatprep.subr.bf16.mxu0 %v2838_v3 }
0x213f   :  { %v1246_v5 = vpop.f32.mrb[10].mxu0 }
0x2140   :  { %v1251_v18 = vadd.f32 %v1246_v5, %v2969_v62  ;;  %v3228_v6 = vpop.f32.mrb[11].mxu0 }
0x2142   :  { %2627 = vtanh.f32 %v1251_v18  ;;  %v2209_v9 = vmul.f32 -1.442695, %v1251_v18 }
0x2144   :  { %2629 = vpow2.f32 %v2209_v9  ;;  %v3273_v9 = vld [vmem:[%s3475_s3] sm:$0x1] }
0x214c   :  { %v2628_v8 = vpop.eup %2627 }
0x214d   :  { %1261 = vrot.lane.b32.xlu0 %v2628_v8, %s2763_s15 }
0x214e   :  { %v2630_v10 = vpop.eup %2629 }
0x214f   :  { %v1255_v13 = vadd.f32 1.0, %v2630_v10 }
0x2151   :  { %2631 = vrcp.f32 %v1255_v13 }
0x215b   :  { %v2632_v14 = vpop.eup %2631 }
0x215c   :  { %v1259_v20 = vmul.f32 %v2632_v14, %v3176_v57 }
0x21bf   :  { %v1262_v17 = vpop.permute.xlu0 %1261 }
0x21c0   :  { %v1264_v19 = vmul.f32 %v2632_v14, %v1262_v17 }
0x21c2   :  { %1266 = vrot.lane.b32.xlu1 %v1264_v19, %s2761_s19 }
0x2234   :  { %v1267_v26 = vpop.permute.xlu1 %1266 }
0x2235   :  { %v3233_v62 = vadd.f32 %v1267_v26, %v1259_v20 }
0x2237   :  { %2633 = vtanh.f32 %v3233_v62 }
0x2241   :  { %v2634_v29 = vpop.eup %2633 }
0x2242   :  { %1272 = vrot.lane.b32.xlu0 %v2634_v29, %s2763_s15 }
0x22b4   :  { %v1273_v37 = vpop.permute.xlu0 %1272 }
0x22b5   :  { %v3237_v56 = vmul.f32 %v2632_v14, %v1273_v37 }
0x22b7   :  { %1277 = vrot.lane.b32.xlu1 %v3237_v56, %s2761_s19 }
0x2329   :  { %v1278_v41 = vpop.permute.xlu1 %1277 }
0x232a   :  { %2319 = vmatmul.mubr.msk.f32.vlgmr.msra.gmra.mrb[8].mxu1 %vm70_vm0, %v1278_v41 }
0x232b   :  { %2483 = vmatpush1.bf16.msra.mxu1 %v2849_v7  ;;  %1487 = vmatprep.mubr.f32.mxu1 %v2762_v11 }
0x232c   :  { %2485 = vmatprep.subr.bf16.mxu1 %v2863_v12 }
0x232f   :  { %2487 = vmatpush1.bf16.msra.mxu1 %v2873_v15 }
0x2330   :  { %2489 = vmatprep.subr.bf16.mxu1 %v2877_v16 }
0x2333   :  { %2491 = vmatpush1.bf16.msra.mxu1 %v2896_v23 }
0x2334   :  { %2493 = vmatprep.subr.bf16.mxu1 %v2900_v24 }
0x2337   :  { %2495 = vmatpush1.bf16.msra.mxu1 %v2911_v27 }
0x2338   :  { %2518 = vmatprep.subr.bf16.mxu1 %v2764_v22 }
0x23fd   :  { %v1347_v57 = vpop.f32.mrb[8].mxu1 }
0x23fe   :  { %v3252_v42 = vadd.f32 %v1347_v57, %v3018_v38  ;;  %v2320_v44 = vpop.f32.mrb[9].mxu1 }
0x2400   :  { %v1351_v52 = vsel %vm374_vm3, %v3252_v42, -inf }
0x2401   :  { %1352 = vmax.xlane.f32.xlu0 %v1351_v52 }
0x248e   :  { %v1353_v35 = vpop.xlane.xlu0 %1352 }
0x248f   :  { %vm1354_vm5 = vcmp.eq.f32.partialorder %v3252_v42, %v1353_v35 }
0x2490   :  { %v1355_v46 = vsel %vm1354_vm5, %v3026_v43, 7  ;;  %vm2113_vm5 = vcmask 56320  }
0x2491   :  { %v1356_v1 = vsel %vm374_vm3, %v1355_v46, 2147483647 }
0x2492   :  { %v1358_v47 = vshra.s32 %v1356_v1, 16  ;;  %v1357_v49 = vand.u32 65535, %v1356_v1 }
0x2494   :  { %v1360_v48 = vcvt.s32.f32 %v1358_v47  ;;  %v1359_v51 = vcvt.s32.f32 %v1357_v49 }
0x2496   :  { %1361 = vmin.xlane.f32.xlu1 %v1360_v48 }
0x2523   :  { %v1362_v50 = vpop.xlane.xlu1 %1361 }
0x2524   :  { %vm1363_vm6 = vcmp.eq.f32.partialorder %v1360_v48, %v1362_v50  ;;  %v1368_v53 = vcvt.f32.s32 %v1362_v50 }
0x2525   :  { %v1364_v38 = vsel %vm1363_vm6, %v1359_v51, inf  ;;  %vm2134_vm6 = vcmask 254976  }
0x2526   :  { %1365 = vmin.xlane.f32.xlu0 %v1364_v38  ;;  %v1369_v36 = vshll.u32 %v1368_v53, 16 }
0x25b3   :  { %v1366_v54 = vpop.xlane.xlu0 %1365 }
0x25b4   :  { %v1367_v55 = vcvt.f32.s32 %v1366_v54 }
0x25b6   :  { %v1370_v31 = vadd.s32 %v1369_v36, %v1367_v55 }
0x25b8   :  { %v1374_v58 = vrot.slane %v1370_v31, %v2928_v33 }
0x25ba   :  { %vm1375_vm8 = vcmp.eq.s32.totalorder %v2925_v32, %v1374_v58 }
0x25bb   :  { %v2211_v60 = vsel %vm1375_vm8, 1.0, %v2762_v11 }
0x25bc   :  { %v1378_v34 = vmul.f32 %v3265_v63, %v2211_v60 }
0x25be   :  { %v1379_v21 = vsel %vm403_vm7, %v1378_v34, 0.0 }
0x25bf   :  { %v1380_v2 = vrot.slane %v1379_v21, 4 }
0x25c1   :  { %v1381_v4 = vadd.f32 %v1380_v2, %v1379_v21  ;;  %v3326_v2 = vld [vmem:[%s3479_s7] sm:$0x1]  ;;  %s2766_s7 = smov 96  }
0x25c3   :  { %v1382_v30 = vrot.slane %v1381_v4, 2 }
0x25c5   :  { %v1383_v59 = vadd.f32 %v1382_v30, %v1381_v4 }
0x25c7   :  { %v1384_v5 = vrot.slane %v1383_v59, 1 }
0x25c9   :  { %v1385_v18 = vadd.f32 %v1384_v5, %v1383_v59 }
0x25cb   :  { %v1386_v8 = vadd.f32 %v1385_v18, %v3228_v6 }
0x25cd   :  { %v1387_v10 = vadd.f32 %v3273_v9, %v1386_v8 }
0x25cf   :  { %2635 = vtanh.f32 %v1387_v10  ;;  %v2212_v14 = vmul.f32 -1.442695, %v1387_v10 }
0x25d1   :  { %2637 = vpow2.f32 %v2212_v14 }
0x25d9   :  { %v2636_v13 = vpop.eup %2635 }
0x25da   :  { %1397 = vrot.lane.b32.xlu0 %v2636_v13, %s2763_s15 }
0x25db   :  { %v2638_v17 = vpop.eup %2637 }
0x25dc   :  { %v1391_v19 = vadd.f32 1.0, %v2638_v17 }
0x25de   :  { %2639 = vrcp.f32 %v1391_v19 }
0x25e8   :  { %v2640_v20 = vpop.eup %2639 }
0x25e9   :  { %v1395_v6 = vmul.f32 %v2640_v20, %v3212_v45 }
0x264c   :  { %v1398_v26 = vpop.permute.xlu0 %1397 }
0x264d   :  { %v1400_v29 = vmul.f32 %v2640_v20, %v1398_v26 }
0x264f   :  { %1402 = vrot.lane.b32.xlu1 %v1400_v29, %s2761_s19 }
0x26c1   :  { %v1403_v37 = vpop.permute.xlu1 %1402 }
0x26c2   :  { %v3279_v41 = vadd.f32 %v1403_v37, %v1395_v6 }
0x26c4   :  { %2641 = vtanh.f32 %v3279_v41 }
0x26ce   :  { %v2642_v57 = vpop.eup %2641 }
0x26cf   :  { %1408 = vrot.lane.b32.xlu1 %v2642_v57, %s2763_s15 }
0x26d3   :  { %1416 = vrot.lane.b32.xlu1 %v3237_v56, %s2763_s15  ;;  %v3297_v56 = vld [vmem:[%s3477_s5] sm:$0x1] }
0x2741   :  { %v1409_v44 = vpop.permute.xlu1 %1408 }
0x2742   :  { %v1411_v52 = vmul.f32 %v2640_v20, %v1409_v44 }
0x2744   :  { %1413 = vrot.lane.b32.xlu0 %v1411_v52, %s2761_s19 }
0x2745   :  { %v1417_v35 = vpop.permute.xlu1 %1416 }
0x27b6   :  { %v1414_v46 = vpop.permute.xlu0 %1413 }
0x27b7   :  { %v1419_v1 = vsel %vm70_vm0, %v1414_v46, %v1417_v35 }
0x27b8   :  { %2213 = vmatmul.mubr.msk.f32.vlgmr.msra.gmra.mrb[10].mxu1 %vm72_vm1, %v1419_v1 }
0x27b9   :  { %2520 = vmatpush3.bf16.msra.mxu1 %v2989_v25  ;;  %2340 = vmatprep.mubr.msk.f32.mxu1 %vm2765_vm2, %v2762_v11 }
0x27ba   :  { %2521 = vmatprep.subr.bf16.mxu1 %v2764_v22 }
0x27bd   :  { %2523 = vmatpush3.bf16.msra.mxu1 %v2998_v28 }
0x27be   :  { %2525 = vmatprep.subr.bf16.mxu1 %v2838_v3 }
0x288b   :  { %v1489_v45 = vpop.f32.mrb[10].mxu1 }
0x288c   :  { %v1494_v47 = vadd.f32 %v3297_v56, %v1489_v45  ;;  %v3300_v48 = vpop.f32.mrb[11].mxu1 }
0x288e   :  { %2643 = vtanh.f32 %v1494_v47  ;;  %v2214_v50 = vmul.f32 -1.442695, %v1494_v47 }
0x2890   :  { %2645 = vpow2.f32 %v2214_v50 }
0x2898   :  { %v2644_v49 = vpop.eup %2643 }
0x2899   :  { %1504 = vrot.lane.b32.xlu0 %v2644_v49, %s2763_s15 }
0x289a   :  { %v2646_v51 = vpop.eup %2645 }
0x289b   :  { %v1498_v38 = vadd.f32 1.0, %v2646_v51 }
0x289d   :  { %2647 = vrcp.f32 %v1498_v38 }
0x28a7   :  { %v2648_v3 = vpop.eup %2647 }
0x28a8   :  { %v1502_v36 = vmul.f32 %v2648_v3, %v3233_v62 }
0x290b   :  { %v1505_v53 = vpop.permute.xlu0 %1504 }
0x290c   :  { %v1507_v54 = vmul.f32 %v2648_v3, %v1505_v53 }
0x290e   :  { %1509 = vrot.lane.b32.xlu1 %v1507_v54, %s2761_s19 }
0x2980   :  { %v1510_v55 = vpop.permute.xlu1 %1509 }
0x2981   :  { %v3305_v31 = vadd.f32 %v1510_v55, %v1502_v36 }
0x2983   :  { %2649 = vtanh.f32 %v3305_v31 }
0x298d   :  { %v2650_v58 = vpop.eup %2649 }
0x298e   :  { %1515 = vrot.lane.b32.xlu0 %v2650_v58, %s2763_s15 }
0x2a00   :  { %v1516_v60 = vpop.permute.xlu0 %1515 }
0x2a01   :  { %v3309_v34 = vmul.f32 %v2648_v3, %v1516_v60 }
0x2a03   :  { %1520 = vrot.lane.b32.xlu1 %v3309_v34, %s2761_s19 }
0x2a75   :  { %v1521_v21 = vpop.permute.xlu1 %1520 }
0x2a76   :  { %2330 = vmatmul.mubr.msk.f32.vlgmr.msra.gmra.mrb[12].mxu0 %vm70_vm0, %v1521_v21 }
0x2a77   :  { %2505 = vmatpush1.bf16.msra.mxu0 %v2849_v7  ;;  %1730 = vmatprep.mubr.f32.mxu0 %v2762_v11 }
0x2a78   :  { %2507 = vmatprep.subr.bf16.mxu0 %v2863_v12 }
0x2a7b   :  { %2509 = vmatpush1.bf16.msra.mxu0 %v2873_v15 }
0x2a7c   :  { %2511 = vmatprep.subr.bf16.mxu0 %v2877_v16 }
0x2a7f   :  { %2513 = vmatpush1.bf16.msra.mxu0 %v2896_v23 }
0x2a80   :  { %2515 = vmatprep.subr.bf16.mxu0 %v2900_v24 }
0x2a83   :  { %2517 = vmatpush1.bf16.msra.mxu0 %v2911_v27 }
0x2a84   :  { %2540 = vmatprep.subr.bf16.mxu0 %v2764_v22 }
0x2b49   :  { %v1590_v62 = vpop.f32.mrb[12].mxu0 }
0x2b4a   :  { %v3329_v4 = vadd.f32 %v3326_v2, %v1590_v62  ;;  %v2331_v30 = vpop.f32.mrb[13].mxu0 }
0x2b4c   :  { %v1594_v59 = vsel %vm374_vm3, %v3329_v4, -inf }
0x2b4d   :  { %1595 = vmax.xlane.f32.xlu0 %v1594_v59 }
0x2bda   :  { %v1596_v5 = vpop.xlane.xlu0 %1595 }
0x2bdb   :  { %vm1597_vm9 = vcmp.eq.f32.partialorder %v3329_v4, %v1596_v5 }
0x2bdc   :  { %v1598_v18 = vsel %vm1597_vm9, %v3026_v43, 7 }
0x2bdd   :  { %v1599_v8 = vsel %vm374_vm3, %v1598_v18, 2147483647 }
0x2bde   :  { %v1601_v10 = vshra.s32 %v1599_v8, 16  ;;  %v1600_v14 = vand.u32 65535, %v1599_v8 }
0x2be0   :  { %v1603_v13 = vcvt.s32.f32 %v1601_v10  ;;  %v1602_v19 = vcvt.s32.f32 %v1600_v14 }
0x2be2   :  { %1604 = vmin.xlane.f32.xlu1 %v1603_v13 }
0x2c6f   :  { %v1605_v17 = vpop.xlane.xlu1 %1604 }
0x2c70   :  { %vm1606_vm10 = vcmp.eq.f32.partialorder %v1603_v13, %v1605_v17  ;;  %v1611_v26 = vcvt.f32.s32 %v1605_v17 }
0x2c71   :  { %v1607_v20 = vsel %vm1606_vm10, %v1602_v19, inf }
0x2c72   :  { %1608 = vmin.xlane.f32.xlu0 %v1607_v20  ;;  %v1612_v6 = vshll.u32 %v1611_v26, 16 }
0x2cff   :  { %v1609_v29 = vpop.xlane.xlu0 %1608 }
0x2d00   :  { %v1610_v37 = vcvt.f32.s32 %v1609_v29 }
0x2d02   :  { %v1613_v57 = vadd.s32 %v1612_v6, %v1610_v37 }
0x2d04   :  { %v1617_v44 = vrot.slane %v1613_v57, %v2928_v33 }
0x2d06   :  { %vm1618_vm11 = vcmp.eq.s32.totalorder %v2925_v32, %v1617_v44 }
0x2d07   :  { %v2216_v52 = vsel %vm1618_vm11, 1.0, %v2762_v11 }
0x2d08   :  { %v1621_v35 = vmul.f32 %v3265_v63, %v2216_v52 }
0x2d0a   :  { %v1622_v46 = vsel %vm403_vm7, %v1621_v35, 0.0 }
0x2d0b   :  { %v1623_v1 = vrot.slane %v1622_v46, 4 }
0x2d0d   :  { %v1624_v45 = vadd.f32 %v1623_v1, %v1622_v46 }
0x2d0f   :  { %v1625_v47 = vrot.slane %v1624_v45, 2 }
0x2d11   :  { %v1626_v49 = vadd.f32 %v1625_v47, %v1624_v45 }
0x2d13   :  { %v1627_v50 = vrot.slane %v1626_v49, 1 }
0x2d15   :  { %v1628_v51 = vadd.f32 %v1627_v50, %v1626_v49 }
0x2d17   :  { %v1629_v38 = vadd.f32 %v1628_v51, %v3300_v48 }
0x2d19   :  { %v1630_v3 = vadd.f32 %v3273_v9, %v1629_v38 }
0x2d1b   :  { %2651 = vtanh.f32 %v1630_v3  ;;  %v2217_v54 = vmul.f32 -1.442695, %v1630_v3 }
0x2d1d   :  { %2653 = vpow2.f32 %v2217_v54 }
0x2d25   :  { %v2652_v53 = vpop.eup %2651 }
0x2d26   :  { %1640 = vrot.lane.b32.xlu0 %v2652_v53, %s2763_s15 }
0x2d27   :  { %v2654_v36 = vpop.eup %2653 }
0x2d28   :  { %v1634_v55 = vadd.f32 1.0, %v2654_v36 }
0x2d2a   :  { %2655 = vrcp.f32 %v1634_v55 }
0x2d34   :  { %v2656_v58 = vpop.eup %2655 }
0x2d35   :  { %v1638_v62 = vmul.f32 %v2656_v58, %v3279_v41 }
0x2d98   :  { %v1641_v60 = vpop.permute.xlu0 %1640 }
0x2d99   :  { %v1643_v21 = vmul.f32 %v2656_v58, %v1641_v60 }
0x2d9b   :  { %1645 = vrot.lane.b32.xlu1 %v1643_v21, %s2761_s19 }
0x2e0d   :  { %v1646_v30 = vpop.permute.xlu1 %1645 }
0x2e0e   :  { %v3346_v48 = vadd.f32 %v1646_v30, %v1638_v62 }
0x2e10   :  { %2657 = vtanh.f32 %v3346_v48 }
0x2e1a   :  { %v2658_v59 = vpop.eup %2657 }
0x2e1b   :  { %1651 = vrot.lane.b32.xlu1 %v2658_v59, %s2763_s15 }
0x2e1f   :  { %1659 = vrot.lane.b32.xlu1 %v3309_v34, %s2763_s15 }
0x2e8d   :  { %v1652_v5 = vpop.permute.xlu1 %1651 }
0x2e8e   :  { %v1654_v18 = vmul.f32 %v2656_v58, %v1652_v5 }
0x2e90   :  { %1656 = vrot.lane.b32.xlu0 %v1654_v18, %s2761_s19 }
0x2e91   :  { %v1660_v8 = vpop.permute.xlu1 %1659 }
0x2f02   :  { %v1657_v10 = vpop.permute.xlu0 %1656 }
0x2f03   :  { %v1662_v13 = vsel %vm70_vm0, %v1657_v10, %v1660_v8 }
0x2f04   :  { %2218 = vmatmul.mubr.msk.f32.vlgmr.msra.gmra.mrb[14].mxu0 %vm72_vm1, %v1662_v13 }
0x2f05   :  { %2542 = vmatpush3.bf16.msra.mxu0 %v2989_v25  ;;  %2351 = vmatprep.mubr.msk.f32.mxu0 %vm2765_vm2, %v2762_v11 }
0x2f06   :  { %2543 = vmatprep.subr.bf16.mxu0 %v2764_v22 }
0x2f09   :  { %2545 = vmatpush3.bf16.msra.mxu0 %v2998_v28 }
0x2fd7   :  { %v1732_v41 = vpop.f32.mrb[14].mxu0 }
0x2fd8   :  { %v1737_v34 = vadd.f32 %v3297_v56, %v1732_v41  ;;  %v3361_v14 = vpop.f32.mrb[15].mxu0 }
0x2fda   :  { %2659 = vtanh.f32 %v1737_v34  ;;  %v2219_v19 = vmul.f32 -1.442695, %v1737_v34 }
0x2fdc   :  { %2661 = vpow2.f32 %v2219_v19 }
0x2fe4   :  { %v2660_v17 = vpop.eup %2659 }
0x2fe5   :  { %1747 = vrot.lane.b32.xlu0 %v2660_v17, %s2763_s15 }
0x2fe6   :  { %v2662_v20 = vpop.eup %2661 }
0x2fe7   :  { %v1741_v25 = vadd.f32 1.0, %v2662_v20 }
0x2fe9   :  { %2663 = vrcp.f32 %v1741_v25 }
0x2ff3   :  { %v2664_v26 = vpop.eup %2663 }
0x2ff4   :  { %v1745_v22 = vmul.f32 %v2664_v26, %v3305_v31 }
0x3057   :  { %v1748_v29 = vpop.permute.xlu0 %1747 }
0x3058   :  { %v1750_v6 = vmul.f32 %v2664_v26, %v1748_v29 }
0x305a   :  { %1752 = vrot.lane.b32.xlu1 %v1750_v6, %s2761_s19 }
0x30cc   :  { %v1753_v28 = vpop.permute.xlu1 %1752 }
0x30cd   :  { %v3366_v37 = vadd.f32 %v1753_v28, %v1745_v22 }
0x30cf   :  { %2665 = vtanh.f32 %v3366_v37 }
0x30d9   :  { %v2666_v57 = vpop.eup %2665 }
0x30da   :  { %1758 = vrot.lane.b32.xlu0 %v2666_v57, %s2763_s15 }
0x314c   :  { %v1759_v44 = vpop.permute.xlu0 %1758 }
0x314d   :  { %v3370_v52 = vmul.f32 %v2664_v26, %v1759_v44 }
0x314f   :  { %1763 = vrot.lane.b32.xlu1 %v3370_v52, %s2761_s19 }
0x31c1   :  { %v1764_v35 = vpop.permute.xlu1 %1763 }
0x31c2   :  { %2341 = vmatmul.mubr.msk.f32.vlgmr.msra.gmra.mrb[12].mxu1 %vm70_vm0, %v1764_v35 }
0x31c3   :  { %2527 = vmatpush1.bf16.msra.mxu1 %v2849_v7  ;;  %1973 = vmatprep.mubr.f32.mxu1 %v2762_v11 }
0x31c4   :  { %2529 = vmatprep.subr.bf16.mxu1 %v2863_v12 }
0x31c7   :  { %2531 = vmatpush1.bf16.msra.mxu1 %v2873_v15 }
0x31c8   :  { %2533 = vmatprep.subr.bf16.mxu1 %v2877_v16 }
0x31cb   :  { %2535 = vmatpush1.bf16.msra.mxu1 %v2896_v23 }
0x31cc   :  { %2537 = vmatprep.subr.bf16.mxu1 %v2900_v24 }
0x31cf   :  { %2539 = vmatpush1.bf16.msra.mxu1 %v2911_v27 }
0x3295   :  { %v1833_v31 = vpop.f32.mrb[12].mxu1 }
0x3296   :  { %v3384_v46 = vadd.f32 %v3326_v2, %v1833_v31  ;;  %v2342_v1 = vpop.f32.mrb[13].mxu1 }
0x3298   :  { %v1837_v7 = vsel %vm374_vm3, %v3384_v46, -inf }
0x3299   :  { %1838 = vmax.xlane.f32.xlu0 %v1837_v7 }
0x3326   :  { %v1839_v12 = vpop.xlane.xlu0 %1838 }
0x3327   :  { %vm1840_vm2 = vcmp.eq.f32.partialorder %v3384_v46, %v1839_v12 }
0x3328   :  { %v1841_v15 = vsel %vm1840_vm2, %v3026_v43, 7 }
0x3329   :  { %v1842_v16 = vsel %vm374_vm3, %v1841_v15, 2147483647  ;;  %vm2102_vm3 = vcmask 1041408  }
0x332a   :  { %v1844_v23 = vshra.s32 %v1842_v16, 16  ;;  %v1843_v27 = vand.u32 65535, %v1842_v16 }
0x332c   :  { %v1846_v24 = vcvt.s32.f32 %v1844_v23  ;;  %v1845_v47 = vcvt.s32.f32 %v1843_v27  ;;  %v2083_v27 = vrot.slane %v3138_v39, 6 }
0x332e   :  { %1847 = vmin.xlane.f32.xlu1 %v1846_v24 }
0x33bb   :  { %v1848_v45 = vpop.xlane.xlu1 %1847 }
0x33bc   :  { %vm1849_vm12 = vcmp.eq.f32.partialorder %v1846_v24, %v1848_v45  ;;  %v1854_v50 = vcvt.f32.s32 %v1848_v45  ;;  %v2080_v24 = vrot.slane %v3081_v61, 7  ;;  %v2089_v45 = vrot.slane %v3252_v42, 4 }
0x33bd   :  { %v1850_v49 = vsel %vm1849_vm12, %v1845_v47, inf }
0x33be   :  { %1851 = vmin.xlane.f32.xlu0 %v1850_v49  ;;  %v1855_v38 = vshll.u32 %v1854_v50, 16  ;;  %v2092_v49 = vrot.slane %v3329_v4, 3 }
0x344b   :  { %v1852_v51 = vpop.xlane.xlu0 %1851 }
0x344c   :  { %v1853_v3 = vcvt.f32.s32 %v1852_v51  ;;  %v2095_v51 = vrot.slane %v3384_v46, 2 }
0x344e   :  { %v1856_v53 = vadd.s32 %v1855_v38, %v1853_v3 }
0x3450   :  { %v1860_v54 = vrot.slane %v1856_v53, %v2928_v33 }
0x3452   :  { %vm1861_vm13 = vcmp.eq.s32.totalorder %v2925_v32, %v1860_v54 }
0x3453   :  { %v2221_v43 = vsel %vm1861_vm13, 1.0, %v2762_v11 }
0x3454   :  { %v1864_v36 = vmul.f32 %v3265_v63, %v2221_v43 }
0x3456   :  { %v1865_v55 = vsel %vm403_vm7, %v1864_v36, 0.0 }
0x3457   :  { %v1866_v58 = vrot.slane %v1865_v55, 4 }
0x3459   :  { %v1867_v60 = vadd.f32 %v1866_v58, %v1865_v55 }
0x345b   :  { %v1868_v21 = vrot.slane %v1867_v60, 2 }
0x345d   :  { %v1869_v62 = vadd.f32 %v1868_v21, %v1867_v60 }
0x345f   :  { %v1870_v30 = vrot.slane %v1869_v62, 1 }
0x3461   :  { %v1871_v59 = vadd.f32 %v1870_v30, %v1869_v62 }
0x3463   :  { %v1872_v5 = vadd.f32 %v1871_v59, %v3361_v14 }
0x3465   :  { %v1873_v18 = vadd.f32 %v3273_v9, %v1872_v5 }
0x3467   :  { %2667 = vtanh.f32 %v1873_v18  ;;  %v2222_v32 = vmul.f32 -1.442695, %v1873_v18 }
0x3469   :  { %2669 = vpow2.f32 %v2222_v32 }
0x3471   :  { %v2668_v33 = vpop.eup %2667 }
0x3472   :  { %1883 = vrot.lane.b32.xlu0 %v2668_v33, %s2763_s15 }
0x3473   :  { %v2670_v11 = vpop.eup %2669 }
0x3474   :  { %v1877_v63 = vadd.f32 1.0, %v2670_v11 }
0x3476   :  { %2671 = vrcp.f32 %v1877_v63 }
0x3480   :  { %v2672_v8 = vpop.eup %2671 }
0x3481   :  { %v1881_v41 = vmul.f32 %v2672_v8, %v3346_v48 }
0x34e4   :  { %v1884_v10 = vpop.permute.xlu0 %1883 }
0x34e5   :  { %v1886_v13 = vmul.f32 %v2672_v8, %v1884_v10 }
0x34e7   :  { %1888 = vrot.lane.b32.xlu1 %v1886_v13, %s2761_s19 }
0x3559   :  { %v1889_v34 = vpop.permute.xlu1 %1888 }
0x355a   :  { %v3401_v14 = vadd.f32 %v1889_v34, %v1881_v41 }
0x355c   :  { %2673 = vtanh.f32 %v3401_v14 }
0x3566   :  { %v2674_v9 = vpop.eup %2673 }
0x3567   :  { %1894 = vrot.lane.b32.xlu1 %v2674_v9, %s2763_s15 }
0x356b   :  { %1902 = vrot.lane.b32.xlu1 %v3370_v52, %s2763_s15 }
0x35d9   :  { %v1895_v17 = vpop.permute.xlu1 %1894 }
0x35da   :  { %v1897_v19 = vmul.f32 %v2672_v8, %v1895_v17 }
0x35dc   :  { %1899 = vrot.lane.b32.xlu0 %v1897_v19, %s2761_s19 }
0x35dd   :  { %v1903_v20 = vpop.permute.xlu1 %1902 }
0x364e   :  { %v1900_v25 = vpop.permute.xlu0 %1899 }
0x364f   :  { %v1905_v26 = vsel %vm70_vm0, %v1900_v25, %v1903_v20 }
0x3650   :  { %2223 = vmatmul.mubr.msk.f32.vlgmr.msra.gmra.mrb[14].mxu1 %vm72_vm1, %v1905_v26  ;;  %vm2100_vm1 = vcmask 1040384  }
0x3651   :  { %v2101_v47 = vsel %vm2100_vm1, %v3021_v40, %v2080_v24 }
0x3652   :  { %v2103_v50 = vsel %vm2102_vm3, %v2101_v47, %v2083_v27 }
0x3723   :  { %v1975_v48 = vpop.f32.mrb[14].mxu1 }
0x3724   :  { %v1979_v29 = vadd.f32 %v3297_v56, %v1975_v48  ;;  %v1977_v6 = vpop.f32.mrb[15].mxu1 }
0x3726   :  { %2675 = vtanh.f32 %v1979_v29  ;;  %v2224_v28 = vmul.f32 -1.442695, %v1979_v29 }
0x3728   :  { %2677 = vpow2.f32 %v2224_v28 }
0x3730   :  { %v2676_v22 = vpop.eup %2675 }
0x3731   :  { %1989 = vrot.lane.b32.xlu0 %v2676_v22, %s2763_s15 }
0x3732   :  { %v2678_v57 = vpop.eup %2677 }
0x3733   :  { %v1983_v44 = vadd.f32 1.0, %v2678_v57 }
0x3735   :  { %2679 = vrcp.f32 %v1983_v44 }
0x373f   :  { %v2680_v52 = vpop.eup %2679 }
0x3740   :  { %v1987_v1 = vmul.f32 %v2680_v52, %v3366_v37  ;;  %v2086_v37 = vrot.slane %v3195_v0, 5 }
0x3742   :  { %v2105_v61 = vsel %vm2104_vm14, %v2103_v50, %v2086_v37 }
0x3743   :  { %v2107_v0 = vsel %vm2106_vm15, %v2105_v61, %v2089_v45 }
0x37a3   :  { %v1990_v35 = vpop.permute.xlu0 %1989 }
0x37a4   :  { %v1992_v31 = vmul.f32 %v2680_v52, %v1990_v35 }
0x37a6   :  { %1994 = vrot.lane.b32.xlu1 %v1992_v31, %s2761_s19 }
0x3818   :  { %v1995_v7 = vpop.permute.xlu1 %1994 }
0x3819   :  { %v1997_v12 = vadd.f32 %v1995_v7, %v1987_v1 }
0x381b   :  { %2681 = vtanh.f32 %v1997_v12  ;;  %v2137_v62 = vrot.slane %v1997_v12, 7 }
0x381d   :  { %v2139_v30 = vsel %vm2100_vm1, %v3401_v14, %v2137_v62 }
0x3825   :  { %v2682_v56 = vpop.eup %2681 }
0x3826   :  { %2000 = vrot.lane.b32.xlu0 %v2682_v56, %s2763_s15 }
0x3898   :  { %v2001_v15 = vpop.permute.xlu0 %2000 }
0x3899   :  { %v2003_v16 = vmul.f32 %v2680_v52, %v2001_v15 }
0x389b   :  { %2005 = vrot.lane.b32.xlu1 %v2003_v16, %s2761_s19  ;;  %v2127_v43 = vrot.slane %v2003_v16, 7 }
0x389d   :  { %v2129_v46 = vsel %vm2100_vm1, %v1897_v19, %v2127_v43 }
0x390d   :  { %v2006_v23 = vpop.permute.xlu1 %2005 }
0x390e   :  { %2352 = vmatmul.mubr.msk.f32.vlgmr.msra.gmra.mrb[16].mxu0 %vm70_vm0, %v2006_v23  ;;  %vm2108_vm0 = vcmask 1044480  }
0x390f   :  { %v2109_v54 = vsel %vm2108_vm0, %v2107_v0, %v2092_v49 }
0x3910   :  { %v2111_v42 = vsel %vm2110_vm4, %v2109_v54, %v2095_v51 }
0x39e1   :  { %v2075_v38 = vpop.f32.mrb[16].mxu0 }
0x39e2   :  { %v2076_v39 = vadd.f32 %v3326_v2, %v2075_v38  ;;  %v2353_v3 = vpop.f32.mrb[17].mxu0 }
0x39e4   :  { %v2098_v53 = vrot.slane %v2076_v39, 1 }
0x39e6   :  { %v2112_v40 = vsel %vm403_vm7, %v2111_v42, %v2098_v53 }
0x39e7   :  { %v2114_v4 = vsel %vm2113_vm5, %v2112_v40, -inf }
0x39e8   :  { %2115 = vmax.xlane.f32.xlu0 %v2114_v4 }
0x39fe   :  { %2131 = vrot.lane.b32.xlu0 %v2129_v46, %s2761_s19  ;;  %s2161_s19 = sshll.u32 %s2767_s13, 4  ;;  %s2162_s19 = int_to_ptr.vmem [resolvable:$true] %s2161_s19 }
0x39ff   :  { %s2691_s0 = scalar_lea.vmem %s2162_s19, 32  ;;  %p2696_p1 = scmp.lt.s32.totalorder %s2162_s19, %s2162_s19 }
0x3a00   :  { %p2692_p0 = scmp.ne.s32.totalorder %s2162_s19, %s2691_s0  ;;  %p2697_p2 = scmp.lt.s32.totalorder %s2691_s0, %s2691_s0 }
0x3a02   :  { %p2698_p3 = por %p2697_p2, %p2696_p1 }
0x3a04   :  { %p2699_p4 = pnand %p2698_p3, %p2692_p0 }
0x3a75   :  { %v2116_v36 = vpop.xlane.xlu0 %2115 }
0x3a76   :  { %v2117_v55 = vsub.f32 %v2112_v40, %v2116_v36 }
0x3a78   :  { %v2118_v2 = vmul.f32 1.442695, %v2117_v55 }
0x3a79   :  { %v2132_v58 = vpop.permute.xlu0 %2131 }
0x3a7a   :  { %2683 = vpow2.f32 %v2118_v2  ;;  %2135 = vst.msk [vmem:[#allocation4] sm:$0x3] %vm2134_vm6, %v2132_v58 }
0x3a84   :  { %v2684_v60 = vpop.eup %2683 }
0x3a85   :  { %v2120_v21 = vsel %vm2113_vm5, %v2684_v60, 0.0 }
0x3a86   :  { %2121 = vadd.xlane.f32.xlu1 %v2120_v21 }
0x3a97   :  { %2141 = vrot.lane.b32.xlu1 %v2139_v30, %s2766_s7 }
0x3a98   :  { %2702 = shalt.err (!%p2699_p4)
}
0x3a99   :  { %s2703_s16 = scalar_lea.hbm %s3481_s9, 32 }
0x3a9a   :  { %p2704_p5 = scmp.ne.s32.totalorder %s3481_s9, %s2703_s16  ;;  %p2707_p6 = scmp.lt.u32.totalorder %s2703_s16, %s3481_s9 }
0x3a9c   :  { %p2709_p7 = pnand %p2707_p6, %p2704_p5 }
0x3a9e   :  { %2712 = shalt.err (!%p2709_p7)
}
0x3a9f   :  { %2164 = dma.vmem_to_hbm [thread:$0]  %s2162_s19, 32, %s3481_s9, [#allocation5]  }
0x3aa0   :  { %s2768_s23 = smov [#allocation6]  }
0x3aa1   :  { %s2171_s24 = sshll.u32 %s2768_s23, 4  ;;  %s2172_s24 = int_to_ptr.vmem [resolvable:$true] %s2171_s24 }
0x3aa2   :  { %s2713_s25 = scalar_lea.vmem %s2172_s24, 32  ;;  %p2718_p9 = scmp.lt.s32.totalorder %s2172_s24, %s2172_s24 }
0x3aa3   :  { %p2714_p8 = scmp.ne.s32.totalorder %s2172_s24, %s2713_s25  ;;  %p2719_p10 = scmp.lt.s32.totalorder %s2713_s25, %s2713_s25 }
0x3aa5   :  { %p2720_p11 = por %p2719_p10, %p2718_p9 }
0x3aa7   :  { %p2721_p12 = pnand %p2720_p11, %p2714_p8 }
0x3b13   :  { %v2122_v59 = vpop.xlane.xlu1 %2121 }
0x3b14   :  { %2685 = vlog2.f32 %v2122_v59 }
0x3b17   :  { %v2142_v5 = vpop.permute.xlu1 %2141 }
0x3b18   :  { %2144 = vst.msk [vmem:[#allocation6] sm:$0x3] %vm2134_vm6, %v2142_v5 }
0x3b19   :  { %2724 = shalt.err (!%p2721_p12)
}
0x3b1a   :  { %s2725_s6 = scalar_lea.hbm %s3482_s10, 32 }
0x3b1b   :  { %p2726_p13 = scmp.ne.s32.totalorder %s3482_s10, %s2725_s6  ;;  %p2729_p0 = scmp.lt.u32.totalorder %s2725_s6, %s3482_s10 }
0x3b1d   :  { %p2731_p1 = pnand %p2729_p0, %p2726_p13 }
0x3b1f   :  { %2734 = shalt.err (!%p2731_p1)
}
0x3b20   :  { %2174 = dma.vmem_to_hbm [thread:$0]  %s2172_s24, 32, %s3482_s10, [#allocation5]   ;;  %v2686_v18 = vpop.eup %2685 }
0x3b21   :  { %s2769_s2 = smov [#allocation2]   ;;  %v2124_v33 = vmul.f32 0.6931472, %v2686_v18 }
0x3b22   :  { %s2151_s3 = sshll.u32 %s2769_s2, 4  ;;  %s2152_s3 = int_to_ptr.vmem [resolvable:$true] %s2151_s3 }
0x3b23   :  { %v2125_v32 = vsub.f32 %v2117_v55, %v2124_v33  ;;  %s2735_s5 = scalar_lea.vmem %s2152_s3, 128  ;;  %p2740_p3 = scmp.lt.s32.totalorder %s2152_s3, %s2152_s3 }
0x3b24   :  { %p2736_p2 = scmp.ne.s32.totalorder %s2152_s3, %s2735_s5  ;;  %p2741_p4 = scmp.lt.s32.totalorder %s2735_s5, %s2735_s5 }
0x3b25   :  { %2126 = vst.msk [vmem:[#allocation2] sm:$0xff] %vm2113_vm5, %v2125_v32 }
0x3b26   :  { %p2742_p5 = por %p2741_p4, %p2740_p3 }
0x3b28   :  { %p2743_p6 = pnand %p2742_p5, %p2736_p2 }
0x3b2a   :  { %2746 = shalt.err (!%p2743_p6)
}
0x3b2b   :  { %s2747_s13 = scalar_lea.hbm %s3480_s8, 128 }
0x3b2c   :  { %p2748_p7 = scmp.ne.s32.totalorder %s3480_s8, %s2747_s13  ;;  %p2751_p8 = scmp.lt.u32.totalorder %s2747_s13, %s3480_s8 }
0x3b2e   :  { %p2753_p9 = pnand %p2751_p8, %p2748_p7 }
0x3b30   :  { %2756 = shalt.err (!%p2753_p9)
}
0x3b31   :  { %2154 = dma.vmem_to_hbm [thread:$0]  %s2152_s3, 128, %s3480_s8, [#allocation3]  }
0x3b32   :  { %2757 = dma.done.wait [#allocation3], 128  }
0x3b33   :  { %2758 = vsyncadd [#allocation3], 4294967168 }
0x3b34   :  { %2759 = dma.done.wait [#allocation5], 64  }
0x3b35   :  { %2760 = vsyncadd [#allocation5], 4294967232 }
0x3b36   :  { %2184 = vsyncpa [#allocation3], 1 }
0x3b37   :  { %2185 = vsyncpa [#allocation5], 1 }

</bundles_post_ra>
